<compile_context>
chip_gen: v7x
topology: tpu7x:2x2x1
jax: 0.10.0
libtpu: 0.0.40
codegen_flags: <defaults>
</compile_context>

<pallas_src>
import functools

import jax
import jax.numpy as jnp
from jax.experimental import pallas as pl
from jax.experimental.pallas import tpu as pltpu


_PALLAS_MIN_BATCH = 64            # below this, custom-call overhead dominates
_TILE_OUT_BYTES_BUDGET = 4 << 20  # ~4 MiB output tile; x2 double buffers plus
                                  # temporaries stays well inside the 32 MiB
                                  # scoped-VMEM default (safe on v7x too)


def _datetime_emb_kernel(t_ref, fp_ref, o_ref):
    """t_ref: (TILE_N, 1) f32, fp_ref: (2, C) f32, o_ref: (TILE_N, C) f32.

    fp_ref row 0 = per-column frequency, row 1 = per-column phase.
    Single full-width (lane-dense) store; cos is sin(x + pi/2); the odd pad
    column has freq=0, phase=0 so it stores exactly 0.

    Note on the ragged last tile: rows beyond the true batch size contain
    whatever padding is in the input block; they run through sin() but are
    never written back to HBM, so they are benign.  Do not add any reduction
    over the tile without masking them first.
    """
    t = t_ref[...]                     # (TILE_N, 1)
    freq = fp_ref[0:1, :]              # (1, C), resident across the grid
    phase = fp_ref[1:2, :]             # (1, C)
    o_ref[...] = jnp.sin(t * freq + phase)


def _build_freq_phase(num_channels: int, flip_sin_to_cos: bool) -> jax.Array:
    """(2, num_channels) table: row 0 = frequency k, row 1 = phase (0 or pi/2)."""
    half = num_channels // 2
    k = jnp.arange(half, dtype=jnp.float32)
    zero = jnp.zeros((half,), jnp.float32)
    halfpi = jnp.full((half,), jnp.pi / 2.0, jnp.float32)
    freq = jnp.concatenate([k, k])
    if flip_sin_to_cos:
        phase = jnp.concatenate([halfpi, zero])   # first half = cos, second = sin
    else:
        phase = jnp.concatenate([zero, halfpi])   # first half = sin, second = cos
    if num_channels % 2 == 1:
        pad = jnp.zeros((1,), jnp.float32)
        freq = jnp.concatenate([freq, pad])       # sin(0*t + 0) == 0 -> pad column
        phase = jnp.concatenate([phase, pad])
    return jnp.stack([freq, phase], axis=0)


def _datetime_reference(timesteps, num_channels, flip_sin_to_cos):
    """Pure-JAX reference (also used as the small-batch fallback path)."""
    half_dim = num_channels // 2
    k = jnp.arange(half_dim, dtype=jnp.float32)
    args = timesteps.astype(jnp.float32)[:, None] * k[None, :]
    emb = jnp.concatenate([jnp.sin(args), jnp.cos(args)], axis=-1)
    if flip_sin_to_cos:
        emb = jnp.concatenate([emb[:, half_dim:], emb[:, :half_dim]], axis=-1)
    if num_channels % 2 == 1:
        emb = jnp.pad(emb, ((0, 0), (0, 1)))
    return emb


def datetime_transform(timesteps: jax.Array,
                       num_channels: int,
                       flip_sin_to_cos: bool,
                       downscale_freq_shift: float = 1.0,
                       *,
                       tile_n: int | None = None,
                       use_pallas: bool | None = None) -> jax.Array:
    """Pallas equivalent of DateTime_Transform.forward.

    timesteps: 1-D array of shape (N,), any numeric dtype.
    Returns (N, num_channels) float32.
    """
    assert timesteps.ndim == 1, "Timesteps should be a 1d-array"
    del downscale_freq_shift  # unused by the reference forward (kept for parity)

    n = timesteps.shape[0]
    half_dim = num_channels // 2

    if use_pallas is None:
        use_pallas = n >= _PALLAS_MIN_BATCH
    if (not use_pallas) or half_dim == 0:
        # Tiny problem (or degenerate num_channels): a pallas_call is pure
        # overhead; let XLA fuse it.
        return _datetime_reference(timesteps, num_channels, flip_sin_to_cos)

    # --- choose the batch tile --------------------------------------------
    n_pad8 = ((n + 7) // 8) * 8
    if tile_n is None:
        # Size purely from the output byte budget; no artificial row cap.
        rows_in_budget = _TILE_OUT_BYTES_BUDGET // (max(num_channels, 1) * 4)
        tile_n = max(8, (rows_in_budget // 8) * 8)
    tile_n = min(tile_n, n_pad8)          # never bigger than (padded) batch
    # v7x megacore: make sure the "parallel" axis has >= 2 iterations whenever
    # there is enough work, so both TensorCores participate.
    if n_pad8 >= 16:
        half_batch = ((-(-n_pad8 // 2) + 7) // 8) * 8   # round_up8(ceil(n_pad8/2))
        tile_n = min(tile_n, half_batch)
    tile_n = max(8, (tile_n // 8) * 8)    # sublane-aligned

    t2d = timesteps.astype(jnp.float32).reshape(n, 1)
    freq_phase = _build_freq_phase(num_channels, flip_sin_to_cos)   # (2, C)
    grid = (pl.cdiv(n, tile_n),)

    emb = pl.pallas_call(
        _datetime_emb_kernel,
        out_shape=jax.ShapeDtypeStruct((n, num_channels), jnp.float32),
        grid_spec=pl.GridSpec(
            grid=grid,
            in_specs=[
                pl.BlockSpec((tile_n, 1), lambda i: (i, 0)),
                # Grid-invariant freq/phase table: constant index_map keeps it
                # resident in VMEM (no re-DMA, no per-step iota rebuild).
                pl.BlockSpec((2, num_channels), lambda i: (0, 0)),
            ],
            out_specs=pl.BlockSpec((tile_n, num_channels), lambda i: (i, 0)),
        ),
        compiler_params=pltpu.CompilerParams(
            # rows are independent -> shard tiles across TCs on v7x megacore
            dimension_semantics=("parallel",),
        ),
    )(t2d, freq_phase)
    # TODO(synk): optional bf16 output variant (cast before the single store)
    # would halve HBM writeback on v5e if the consumer accepts bf16.
    return emb


if __name__ == "__main__":
    key = jax.random.PRNGKey(0)
    k1, k2, k3 = jax.random.split(key, 3)

    # cos(x) is computed as sin(x + pi/2); the f32 rounding of the phase add
    # introduces up to ~ulp(|arg|) argument error, so keep test timesteps
    # modest and tolerances at 1e-3.
    TOL = dict(atol=1e-3, rtol=1e-3)

    # Case 1: Pallas path — even channels, flip_sin_to_cos=True.
    n1, c1 = 256, 32
    t1 = jax.random.uniform(k1, (n1,), minval=0.0, maxval=50.0)
    out1 = jax.block_until_ready(
        datetime_transform(t1, c1, True, 1.0, use_pallas=True))
    ref1 = _datetime_reference(t1, c1, True)
    assert out1.shape == (n1, c1), out1.shape
    assert jnp.allclose(out1, ref1, **TOL), "case1 mismatch"

    # Case 2: Pallas path — odd channels, no flip, forced small tile so the
    # grid has multiple steps and a ragged last tile.
    n2, c2 = 200, 33
    t2 = jax.random.uniform(k2, (n2,), minval=0.0, maxval=50.0)
    out2 = jax.block_until_ready(
        datetime_transform(t2, c2, False, 1.0, tile_n=64, use_pallas=True))
    ref2 = _datetime_reference(t2, c2, False)
    assert out2.shape == (n2, c2), out2.shape
    assert jnp.allclose(out2, ref2, **TOL), "case2 mismatch"
    assert jnp.all(out2[:, -1] == 0.0), "odd-channel zero column missing"

    # Case 3: tiny batch — falls back to the pure-XLA path (same semantics).
    n3, c3 = 8, 32
    t3 = jax.random.uniform(k3, (n3,), minval=0.0, maxval=50.0)
    out3 = jax.block_until_ready(datetime_transform(t3, c3, True, 1.0))
    ref3 = _datetime_reference(t3, c3, True)
    assert out3.shape == (n3, c3), out3.shape
    assert jnp.allclose(out3, ref3, **TOL), "case3 mismatch"

    print("KERNEL_OK")
</pallas_src>

<mosaic_0001>
module attributes {stable_mosaic.version = 11 : i64} {
  func.func @_datetime_emb_kernel(%arg0: i32, %arg1: memref<128x1xf32, #tpu.memory_space<vmem>>, %arg2: memref<2x32xf32, #tpu.memory_space<vmem>>, %arg3: memref<128x32xf32, #tpu.memory_space<vmem>>) attributes {dimension_semantics = [#tpu.dimension_semantics<parallel>], iteration_bounds = array<i64: 2>, scalar_prefetch = 0 : i64, scratch_operands = 0 : i64, tpu.core_type = #tpu.core_type<tc>, window_params = [{transform_indices = @transform_0, window_bounds = array<i64: 128, 1>}, {pipeline_mode = #tpu.pipeline_mode<synchronous>, transform_indices = @transform_1, window_bounds = array<i64: 2, 32>}, {transform_indices = @transform_2, window_bounds = array<i64: 128, 32>}]} {
    %c0 = arith.constant 0 : index
    %c0_0 = arith.constant 0 : index
    %0 = vector.load %arg1[%c0, %c0_0] : memref<128x1xf32, #tpu.memory_space<vmem>>, vector<128x1xf32>
    %c0_1 = arith.constant 0 : index
    %c0_2 = arith.constant 0 : index
    %1 = vector.load %arg2[%c0_1, %c0_2] : memref<2x32xf32, #tpu.memory_space<vmem>>, vector<1x32xf32>
    %c1 = arith.constant 1 : index
    %c0_3 = arith.constant 0 : index
    %2 = vector.load %arg2[%c1, %c0_3] : memref<2x32xf32, #tpu.memory_space<vmem>>, vector<1x32xf32>
    %3 = vector.broadcast %0 : vector<128x1xf32> to vector<128x32xf32>
    %4 = vector.broadcast %1 : vector<1x32xf32> to vector<128x32xf32>
    %5 = arith.mulf %3, %4 : vector<128x32xf32>
    %6 = vector.broadcast %2 : vector<1x32xf32> to vector<128x32xf32>
    %7 = arith.addf %5, %6 : vector<128x32xf32>
    %8 = math.sin %7 : vector<128x32xf32>
    %c0_4 = arith.constant 0 : index
    %c0_5 = arith.constant 0 : index
    %9 = vector.load %arg3[%c0_4, %c0_5] : memref<128x32xf32, #tpu.memory_space<vmem>>, vector<128x32xf32>
    tpu.vector_store %arg3[%c0_4, %c0_5], %8 {strides = array<i32>} : memref<128x32xf32, #tpu.memory_space<vmem>>, vector<128x32xf32>,
    return
  }
  func.func @transform_0(%arg0: i32) -> (i32, i32) {
    %c0_i32 = arith.constant 0 : i32
    %c0_i32_0 = arith.constant 0 : i32
    return %arg0, %c0_i32 : i32, i32
  }
  func.func @transform_1(%arg0: i32) -> (i32, i32) {
    %c0_i32 = arith.constant 0 : i32
    %c0_i32_0 = arith.constant 0 : i32
    %c0_i32_1 = arith.constant 0 : i32
    return %c0_i32, %c0_i32_0 : i32, i32
  }
  func.func @transform_2(%arg0: i32) -> (i32, i32) {
    %c0_i32 = arith.constant 0 : i32
    %c0_i32_0 = arith.constant 0 : i32
    return %arg0, %c0_i32 : i32, i32
  }
}

</mosaic_0001>

<bundles_post_ra>
// kernel: tpu_custom_call.1
= control target key start
LH: loop header
LB: loop body
LE: loop exit
PB: predicated region body
PF: predicated region fallthrough
CT: control target
= control target key end

     0   :  { %s2278_s9 = smov 0   ;;  %s3568_s0 = inlined_call_operand.vmem [shape: f32[256,1], index: 0, kind: input, shape index: {}]   ;;  %s3569_s1 = inlined_call_operand.vmem [shape: f32[2,32], index: 1, kind: input, shape index: {}]   ;;  %s3570_s2 = inlined_call_operand.vmem [shape: f32[256,32], index: 2, kind: output, shape index: {}]  }
   0x1 LB: > { %s2022_s10 = sadd.s32 4294967295, %s2254_s9   ;;  %p2026_p0 = scmp.ge.s32.totalorder %s2254_s9, 1  ;;  %s2254_s9 = sphi %s2278_s9, %s12_s9  }
   0x2   : > { %p113_p1 = scmp.lt.s32.totalorder %s2254_s9, 3 }
   0x4   : > { %p114_p2 = pnand %p2026_p0, %p113_p1 }
   0x5   : > { %s2027_s11 = sshll.u32 (!%p114_p2), %s2022_s10, 4  ;;  %v2256_v0 = vmov (!%p114_p2), 0   ;;  %v2297_v17 = vld [vmem:[%s3569_s1] ss:$0 sm:$0xff] (!%p114_p2)  ;;  %v2302_v18 = vld [vmem:[%s3569_s1 + $0x1] ss:$0 sm:$0xff] (!%p114_p2) }
   0x6   : > { %117 = sbr.rel (%p114_p2) target bundleno = 585 (0x249), region = 28  ;;  %2179 = vset.pattern.permute.xlu1 (!%p114_p2), %v2256_v0  ;;  %2178 = vset.pattern.permute.xlu0 (!%p114_p2), %v2256_v0  ;;  %p136_p3 = scmp.lt.s32.totalorder (!%p114_p2), %s2027_s11, 31  ;;  %v2257_v55 = vmov (!%p114_p2), 683565275   ;;  %v2258_v59 = vmov (!%p114_p2), 2475754826  }
   0x7   : > { %v2259_v61 = vmov (!%p114_p2), 2131351028   ;;  %v2260_v63 = vmov (!%p114_p2), 2102212464  }
   0xd   : > { %s3600_s11 = smov (!%p136_p3, %s2027_s11), 31 }
   0xe   : > { %s2028_s12 = sshll.u32 %s3600_s11, 3 }
   0xf   : > { %s139_s15 = scalar_lea.vmem %s3568_s0, %s2028_s12  ;;  %s2571_s22 = scalar_lea.vmem %s3570_s2, %s2028_s12 }
  0x10   : > { %v149_v1 = vld [vmem:[%s139_s15 + $0x10] sm:$0xff]  ;;  %v147_v2 = vld [vmem:[%s139_s15] sm:$0xff]  ;;  %v150_v3 = vld [vmem:[%s139_s15 + $0x18] sm:$0xff] }
  0x11   : > { %177 = vperm.xlu1 %2179, %v149_v1   ;;  %167 = vperm.xlu0 %2178, %v147_v2   ;;  %v148_v4 = vld [vmem:[%s139_s15 + $0x8] sm:$0xff]  ;;  %v151_v6 = vld [vmem:[%s139_s15 + $0x20] sm:$0xff]  ;;  %v154_v7 = vld [vmem:[%s139_s15 + $0x38] sm:$0xff]  ;;  %v2261_v1 = vmov 920167782  }
  0x12   : > { %v152_v5 = vld [vmem:[%s139_s15 + $0x28] sm:$0xff]  ;;  %v153_v8 = vld [vmem:[%s139_s15 + $0x30] sm:$0xff]  ;;  %v155_v10 = vld [vmem:[%s139_s15 + $0x40] sm:$0xff] }
  0x13   : > { %v156_v9 = vld [vmem:[%s139_s15 + $0x48] sm:$0xff]  ;;  %v158_v11 = vld [vmem:[%s139_s15 + $0x58] sm:$0xff]  ;;  %v157_v12 = vld [vmem:[%s139_s15 + $0x50] sm:$0xff] }
  0x14   : > { %v160_v13 = vld [vmem:[%s139_s15 + $0x68] sm:$0xff]  ;;  %v159_v14 = vld [vmem:[%s139_s15 + $0x60] sm:$0xff]  ;;  %v162_v15 = vld [vmem:[%s139_s15 + $0x78] sm:$0xff] }
  0x15   : > { %182 = vperm.xlu1 %2179, %v150_v3   ;;  %172 = vperm.xlu0 %2178, %v148_v4   ;;  %v161_v16 = vld [vmem:[%s139_s15 + $0x70] sm:$0xff] }
  0x19   : > { %192 = vperm.xlu1 %2179, %v152_v5   ;;  %187 = vperm.xlu0 %2178, %v151_v6  }
  0x1d   : > { %202 = vperm.xlu1 %2179, %v154_v7   ;;  %197 = vperm.xlu0 %2178, %v153_v8   ;;  %v2262_v8 = vmov 1326507024  }
  0x21   : > { %212 = vperm.xlu1 %2179, %v156_v9   ;;  %207 = vperm.xlu0 %2178, %v155_v10  }
  0x25   : > { %222 = vperm.xlu1 %2179, %v158_v11   ;;  %217 = vperm.xlu0 %2178, %v157_v12  }
  0x29   : > { %232 = vperm.xlu1 %2179, %v160_v13   ;;  %227 = vperm.xlu0 %2178, %v159_v14  }
  0x2d   : > { %242 = vperm.xlu1 %2179, %v162_v15   ;;  %237 = vperm.xlu0 %2178, %v161_v16  }
  0x90   : > { %v178_v19 = vpop.permute.xlu1 %177  ;;  %v168_v20 = vpop.permute.xlu0 %167 }
  0x91   : > { %v251_v21 = vmul.f32 %v2297_v17, %v178_v19  ;;  %v249_v22 = vmul.f32 %v2297_v17, %v168_v20 }
  0x93   : > { %v2307_v23 = vadd.f32 %v2302_v18, %v251_v21  ;;  %v2310_v24 = vadd.f32 %v2302_v18, %v249_v22 }
  0x94   : > { %v183_v25 = vpop.permute.xlu1 %182  ;;  %v173_v43 = vpop.permute.xlu0 %172 }
  0x95   : > { %v493_v26 = vand.u32 2147483647, %v2307_v23  ;;  %v496_v27 = vand.u32 2139095040, %v2307_v23  ;;  %v285_v28 = vand.u32 2147483647, %v2310_v24  ;;  %v288_v29 = vand.u32 2139095040, %v2310_v24 }
  0x96   : > { %v252_v31 = vmul.f32 %v2297_v17, %v183_v25  ;;  %v2326_v49 = vmul.f32 %v2297_v17, %v173_v43  ;;  %vm495_vm13 = vcmp.lt.s32.totalorder %v2307_v23, 0  ;;  %vm287_vm14 = vcmp.lt.s32.totalorder %v2310_v24, 0 }
  0x97   : > { %v497_v30 = vshrl.u32 %v496_v27, 23  ;;  %v500_v32 = vand.u32 8388607, %v493_v26  ;;  %v289_v33 = vshrl.u32 %v288_v29, 23  ;;  %v292_v34 = vand.u32 8388607, %v285_v28 }
  0x98   : > { %v2322_v36 = vadd.f32 %v2302_v18, %v252_v31 }
  0x99   : > { %v2041_v35 = vadd.s32 4294967169, %v497_v30  ;;  %v2033_v37 = vadd.s32 4294967169, %v289_v33  ;;  %v501_v39 = vor.u32 8388608, %v500_v32  ;;  %v293_v40 = vor.u32 8388608, %v292_v34 }
  0x9a   : > { %v600_v42 = vand.u32 2139095040, %v2322_v36  ;;  %v597_v53 = vand.u32 2147483647, %v2322_v36 }
  0x9b   : > { %v503_v38 = vadd.s32 1, %v2041_v35  ;;  %v295_v41 = vadd.s32 1, %v2033_v37  ;;  %v2328_v50 = vshll.u32 %v501_v39, 8  ;;  %v2332_v52 = vshll.u32 %v293_v40, 8 }
  0x9c   : > { %v601_v45 = vshrl.u32 %v600_v42, 23 }
  0x9d   : > { %vm504_vm0 = vcmp.gt.s32.totalorder %v503_v38, 0  ;;  %vm296_vm1 = vcmp.gt.s32.totalorder %v295_v41, 0 }
  0x9e   : > { %v505_v44 = vsel %vm504_vm0, %v503_v38, 0  ;;  %v297_v48 = vsel %vm296_vm1, %v295_v41, 0  ;;  %v2336_v58 = vadd.s32 4294967169, %v601_v45  ;;  %vm2444_vm1 = vcmp.le.f32.partialorder %v493_v26, 0.7853982 }
  0x9f   : > { %v506_v46 = vshrl.u32 %v505_v44, 5  ;;  %v507_v47 = vand.u32 31, %v505_v44  ;;  %v2330_v51 = vshrl.u32 %v297_v48, 5  ;;  %v299_v57 = vand.u32 31, %v297_v48 }
  0xa1   : > { %v508_v54 = vsub.s32 32, %v507_v47  ;;  %v510_v56 = vshll.u32 %v2257_v55, %v507_v47  ;;  %v513_v60 = vshll.u32 %v2258_v59, %v507_v47  ;;  %v516_v62 = vshll.u32 %v2259_v61, %v507_v47 }
  0xa2   : > { %v519_v0 = vshll.u32 %v2260_v63, %v507_v47  ;;  %v522_v2 = vshll.u32 %v2261_v1, %v507_v47  ;;  %vm525_vm2 = vcmp.lt.s32.totalorder %v506_v46, 1  ;;  %vm526_vm3 = vcmp.lt.s32.totalorder %v506_v46, 2 }
  0xa3   : > { %v511_v3 = vshrl.u32 %v2258_v59, %v508_v54  ;;  %v514_v4 = vshrl.u32 %v2259_v61, %v508_v54  ;;  %v517_v5 = vshrl.u32 %v2260_v63, %v508_v54  ;;  %v509_v6 = vshrl.u32 %v2257_v55, %v508_v54 }
  0xa4   : > { %v520_v7 = vshrl.u32 %v2261_v1, %v508_v54  ;;  %v523_v9 = vshrl.u32 %v2262_v8, %v508_v54  ;;  %v300_v13 = vsub.s32 32, %v299_v57  ;;  %vm527_vm4 = vcmp.lt.s32.totalorder %v506_v46, 3 }
  0xa5   : > { %v512_v10 = vor.u32 %v511_v3, %v510_v56  ;;  %v515_v11 = vor.u32 %v514_v4, %v513_v60  ;;  %v518_v12 = vor.u32 %v517_v5, %v516_v62  ;;  %vm528_vm5 = vcmp.lt.s32.totalorder %v506_v46, 4 }
  0xa6   : > { %v521_v14 = vor.u32 %v520_v7, %v519_v0  ;;  %v524_v15 = vor.u32 %v523_v9, %v522_v2  ;;  %v302_v29 = vshll.u32 %v2257_v55, %v299_v57  ;;  %v303_v32 = vshrl.u32 %v2258_v59, %v300_v13 }
  0xa7   : > { %v529_v16 = vsel %vm525_vm2, %v509_v6, %v512_v10  ;;  %v530_v19 = vsel %vm528_vm5, %v518_v12, 2102212464  ;;  %v533_v20 = vsel %vm525_vm2, %v512_v10, %v515_v11  ;;  %v537_v21 = vsel %vm525_vm2, %v515_v11, %v518_v12 }
  0xa8   : > { %v531_v22 = vsel %vm527_vm4, %v515_v11, %v530_v19  ;;  %v534_v25 = vsel %vm528_vm5, %v521_v14, 920167782  ;;  %v538_v27 = vsel %vm528_vm5, %v524_v15, 1326507024  ;;  %v305_v33 = vshll.u32 %v2258_v59, %v299_v57 }
  0xa9   : > { %v535_v30 = vsel %vm527_vm4, %v518_v12, %v534_v25  ;;  %v539_v31 = vsel %vm527_vm4, %v521_v14, %v538_v27  ;;  %v532_v34 = vsel %vm526_vm3, %v529_v16, %v531_v22  ;;  %v306_v38 = vshrl.u32 %v2259_v61, %v300_v13 }
  0xaa   : > { %v536_v35 = vsel %vm526_vm3, %v533_v20, %v535_v30  ;;  %v540_v37 = vsel %vm526_vm3, %v537_v21, %v539_v31  ;;  %v304_v43 = vor.u32 %v303_v32, %v302_v29  ;;  %v308_v45 = vshll.u32 %v2259_v61, %v299_v57 }
  0xab   : > { %v2359_v39 = vmul.u32.u64.low %v2328_v50, %v540_v37  ;;  %v2360_v40 = vmul.u32.u64.high %v2328_v50, %v540_v37, %v2359_v39  ;;  %v2363_v41 = vmul.u32.u64.low %v2328_v50, %v536_v35  ;;  %v2364_v42 = vmul.u32.u64.high %v2328_v50, %v536_v35, %v2363_v41 }
  0xac   : > { %v307_v44 = vor.u32 %v306_v38, %v305_v33  ;;  %v309_v47 = vshrl.u32 %v2260_v63, %v300_v13  ;;  %v301_v48 = vshrl.u32 %v2257_v55, %v300_v13  ;;  %v311_v46 = vshll.u32 %v2260_v63, %v299_v57 }
  0xad   : > { %v312_v54 = vshrl.u32 %v2261_v1, %v300_v13  ;;  %v315_v56 = vshrl.u32 %v2262_v8, %v300_v13  ;;  %v548_v60 = vmul.u32 %v2328_v50, %v532_v34  ;;  %v314_v0 = vshll.u32 %v2261_v1, %v299_v57 }
  0xae   : > { %v310_v62 = vor.u32 %v309_v47, %v308_v45  ;;  %vm317_vm6 = vcmp.lt.s32.totalorder %v2330_v51, 1  ;;  %vm550_vm7 = vc.u32 %v2360_v40, %v2363_v41  ;;  %v551_v2 = vadd.s32 1, %v2364_v42 }
  0xaf   : > { %v313_v3 = vor.u32 %v312_v54, %v311_v46  ;;  %vm318_vm8 = vcmp.lt.s32.totalorder %v2330_v51, 2  ;;  %v316_v4 = vor.u32 %v315_v56, %v314_v0  ;;  %vm319_vm9 = vcmp.lt.s32.totalorder %v2330_v51, 3 }
  0xb0   : > { %vm320_vm10 = vcmp.lt.s32.totalorder %v2330_v51, 4  ;;  %v325_v5 = vsel %vm317_vm6, %v304_v43, %v307_v44  ;;  %v552_v50 = vsel %vm550_vm7, %v551_v2, %v2364_v42  ;;  %v329_v57 = vsel %vm317_vm6, %v307_v44, %v310_v62  ;;  %v193_v42 = vpop.permute.xlu1 %192 }
  0xb1   : > { %v322_v6 = vsel %vm320_vm10, %v310_v62, 2102212464  ;;  %v326_v7 = vsel %vm320_vm10, %v313_v3, 920167782  ;;  %v553_v9 = vadd.s32 %v552_v50, %v548_v60  ;;  %v321_v10 = vsel %vm317_vm6, %v301_v48, %v304_v43 }
  0xb2   : > { %v327_v11 = vsel %vm319_vm9, %v310_v62, %v326_v7  ;;  %v330_v12 = vsel %vm320_vm10, %v316_v4, 1326507024  ;;  %v323_v13 = vsel %vm319_vm9, %v307_v44, %v322_v6  ;;  %v607_v16 = vadd.s32 1, %v2336_v58 }
  0xb3   : > { %v328_v14 = vsel %vm318_vm8, %v325_v5, %v327_v11  ;;  %v331_v15 = vsel %vm319_vm9, %v313_v3, %v330_v12  ;;  %v554_v19 = vadd.s32 536870912, %v553_v9  ;;  %v604_v29 = vand.u32 8388607, %v597_v53 }
  0xb4   : > { %v332_v20 = vsel %vm318_vm8, %v329_v57, %v331_v15  ;;  %v2387_v21 = vmul.u32.u64.low %v2332_v52, %v328_v14  ;;  %v2388_v22 = vmul.u32.u64.high %v2332_v52, %v328_v14, %v2387_v21  ;;  %vm608_vm11 = vcmp.gt.s32.totalorder %v607_v16, 0 }
  0xb5   : > { %v2392_v25 = vmul.u32.u64.low %v2332_v52, %v332_v20  ;;  %v2393_v27 = vmul.u32.u64.high %v2332_v52, %v332_v20, %v2392_v25  ;;  %v555_v30 = vshrl.u32 %v554_v19, 30  ;;  %v324_v58 = vsel %vm318_vm8, %v321_v10, %v323_v13 }
  0xb6   : > { %v609_v31 = vsel %vm608_vm11, %v607_v16, 0  ;;  %v343_v34 = vadd.s32 1, %v2388_v22  ;;  %v2402_v35 = vadd.f32 %v2302_v18, %v2326_v49  ;;  %v340_v37 = vmul.u32 %v2332_v52, %v324_v58 }
  0xb7   : > { %v611_v32 = vand.u32 31, %v609_v31  ;;  %v556_v33 = vshll.u32 %v555_v30, 30  ;;  %vm342_vm12 = vc.u32 %v2393_v27, %v2387_v21  ;;  %v605_v38 = vor.u32 8388608, %v604_v29 }
  0xb8   : > { %v344_v51 = vsel %vm342_vm12, %v343_v34, %v2388_v22  ;;  %v549_v45 = vadd.s32 %v2363_v41, %v2360_v40  ;;  %v389_v47 = vand.u32 2147483647, %v2402_v35  ;;  %v2415_v52 = vmul.f32 %v2297_v17, %v193_v42 }
  0xb9   : > { %v612_v39 = vsub.s32 32, %v611_v32  ;;  %v2407_v43 = vsub.s32 %v553_v9, %v556_v33  ;;  %v345_v44 = vadd.s32 %v344_v51, %v340_v37  ;;  %v2418_v54 = vshll.u32 %v605_v38, 8 }
  0xba   : > { %v392_v56 = vand.u32 2139095040, %v2402_v35  ;;  %v2422_v62 = vshrl.u32 %v609_v31, 5  ;;  %v579_v0 = vsub.s32 4, %v555_v30  ;;  %v614_v3 = vshll.u32 %v2257_v55, %v611_v32 }
  0xbb   : > { %v559_v49 = vsub.s32 0, %v2407_v43  ;;  %v346_v48 = vadd.s32 536870912, %v345_v44  ;;  %v615_v46 = vshrl.u32 %v2258_v59, %v612_v39  ;;  %v618_v40 = vshrl.u32 %v2259_v61, %v612_v39 }
  0xbc   : > { %v621_v41 = vshrl.u32 %v2260_v63, %v612_v39  ;;  %v624_v4 = vshrl.u32 %v2261_v1, %v612_v39  ;;  %v617_v50 = vshll.u32 %v2258_v59, %v611_v32  ;;  %v620_v6 = vshll.u32 %v2259_v61, %v611_v32 }
  0xbd   : > { %v2042_v60 = vmin.u32 %v559_v49, %v2407_v43  ;;  %v347_v2 = vshrl.u32 %v346_v48, 30  ;;  %v627_v7 = vshrl.u32 %v2262_v8, %v612_v39  ;;  %v616_v9 = vor.u32 %v615_v46, %v614_v3 }
  0xbe   : > { %v623_v10 = vshll.u32 %v2260_v63, %v611_v32  ;;  %v393_v11 = vshrl.u32 %v392_v56, 23  ;;  %v619_v13 = vor.u32 %v618_v40, %v617_v50  ;;  %v622_v14 = vor.u32 %v621_v41, %v620_v6 }
  0xbf   : > { %v561_v5 = vclz %v2042_v60  ;;  %v348_v57 = vshll.u32 %v347_v2, 30  ;;  %v626_v15 = vshll.u32 %v2261_v1, %v611_v32  ;;  %v2435_v16 = vsel %vm495_vm13, %v579_v0, %v555_v30 }
  0xc0   : > { %v613_v20 = vshrl.u32 %v2257_v55, %v612_v39  ;;  %v625_v22 = vor.u32 %v624_v4, %v623_v10  ;;  %v371_v25 = vsub.s32 4, %v347_v2  ;;  %vm629_vm0 = vcmp.lt.s32.totalorder %v2422_v62, 1 }
  0xc1   : > { %v2043_v12 = vadd.s32 4294967294, %v561_v5  ;;  %v2438_v19 = vsub.s32 %v345_v44, %v348_v57  ;;  %v628_v29 = vor.u32 %v627_v7, %v626_v15  ;;  %vm631_vm2 = vcmp.lt.s32.totalorder %v2422_v62, 3 }
  0xc2   : > { %vm632_vm3 = vcmp.lt.s32.totalorder %v2422_v62, 4  ;;  %vm2453_vm4 = vcmp.le.f32.partialorder %v285_v28, 0.7853982  ;;  %v637_v26 = vsel %vm629_vm0, %v616_v9, %v619_v13  ;;  %v641_v51 = vsel %vm629_vm0, %v619_v13, %v622_v14 }
  0xc3   : > { %vm2044_vm15 = vcmp.lt.s32.totalorder %v2043_v12, 0  ;;  %v351_v31 = vsub.s32 0, %v2438_v19  ;;  %v634_v37 = vsel %vm632_vm3, %v622_v14, 2102212464  ;;  %v638_v42 = vsel %vm632_vm3, %v625_v22, 920167782 }
  0xc4   : > { %v564_v30 = vsel %vm2044_vm15, 0, %v2043_v12  ;;  %v639_v28 = vsel %vm631_vm2, %v622_v14, %v638_v42  ;;  %v642_v48 = vsel %vm632_vm3, %v628_v29, 1326507024  ;;  %vm630_vm5 = vcmp.lt.s32.totalorder %v2422_v62, 2 }
  0xc5   : > { %v565_v32 = vsub.s32 32, %v564_v30  ;;  %v569_v33 = vsub.s32 4294967266, %v564_v30  ;;  %v566_v38 = vshll.u32 %v2407_v43, %v564_v30  ;;  %v2034_v39 = vmin.u32 %v351_v31, %v2438_v19 }
  0xc6   : > { %v633_v56 = vsel %vm629_vm0, %v613_v20, %v616_v9  ;;  %v635_v43 = vsel %vm631_vm2, %v619_v13, %v634_v37  ;;  %v640_v41 = vsel %vm630_vm5, %v637_v26, %v639_v28  ;;  %v372_v6 = vsel %vm287_vm14, %v371_v25, %v347_v2  ;;  %v188_v26 = vpop.permute.xlu0 %187 }
  0xc7   : > { %v567_v44 = vshrl.u32 %v549_v45, %v565_v32  ;;  %v570_v49 = vadd.s32 127, %v569_v33  ;;  %v353_v46 = vclz %v2034_v39  ;;  %v643_v45 = vsel %vm631_vm2, %v625_v22, %v642_v48 }
  0xc8   : > { %v644_v3 = vsel %vm630_vm5, %v641_v51, %v643_v45  ;;  %v2473_v4 = vmul.u32.u64.low %v2418_v54, %v640_v41  ;;  %v2474_v5 = vmul.u32.u64.high %v2418_v54, %v640_v41, %v2473_v4  ;;  %v341_v9 = vadd.s32 %v2387_v21, %v2393_v27 }
  0xc9   : > { %v568_v60 = vor.u32 %v567_v44, %v566_v38  ;;  %v571_v40 = vshll.u32 %v570_v49, 23  ;;  %v2035_v0 = vadd.s32 4294967294, %v353_v46  ;;  %v636_v62 = vsel %vm630_vm5, %v633_v56, %v635_v43 }
  0xca   : > { %v2479_v7 = vmul.u32.u64.low %v2418_v54, %v644_v3  ;;  %v2480_v57 = vmul.u32.u64.high %v2418_v54, %v644_v3, %v2479_v7  ;;  %v2037_v10 = vadd.s32 4294967169, %v393_v11  ;;  %v582_v14 = vsel %vm2444_vm1, 0, %v2435_v16 }
  0xcb   : > { %v572_v50 = vor.u32 4788187, %v571_v40  ;;  %vm2036_vm6 = vcmp.lt.s32.totalorder %v2035_v0, 0  ;;  %v575_v13 = vcvt.s32.f32 %v568_v60  ;;  %v374_v2 = vsel %vm2453_vm4, 0, %v372_v6 }
  0xcc   : > { %v356_v15 = vsel %vm2036_vm6, 0, %v2035_v0  ;;  %v655_v25 = vadd.s32 1, %v2474_v5  ;;  %v652_v21 = vmul.u32 %v2418_v54, %v636_v62  ;;  %vm654_vm7 = vc.u32 %v2480_v57, %v2473_v4 }
  0xcd   : > { %v573_v12 = vand.u32 2147483647, %v572_v50  ;;  %v357_v20 = vsub.s32 32, %v356_v15  ;;  %v361_v22 = vsub.s32 4294967266, %v356_v15  ;;  %v399_v27 = vadd.s32 1, %v2037_v10 }
  0xce   : > { %v358_v11 = vshll.u32 %v2438_v19, %v356_v15  ;;  %v656_v16 = vsel %vm654_vm7, %v655_v25, %v2474_v5  ;;  %v586_v33 = vadd.s32 3, %v582_v14  ;;  %v378_v42 = vadd.s32 3, %v374_v2 }
  0xcf   : > { %v576_v29 = vmul.f32 %v575_v13, %v573_v12  ;;  %v359_v30 = vshrl.u32 %v341_v9, %v357_v20  ;;  %v362_v31 = vadd.s32 127, %v361_v22  ;;  %v657_v37 = vadd.s32 %v656_v16, %v652_v21 }
  0xd0   : > { %vm400_vm8 = vcmp.gt.s32.totalorder %v399_v27, 0  ;;  %v396_v19 = vand.u32 8388607, %v389_v47  ;;  %v2502_v46 = vmul.f32 %v2297_v17, %v188_v26  ;;  %v2504_v56 = vand.u32 3, %v586_v33 }
  0xd1   : > { %v577_v32 = vxor.u32 2147483648, %v576_v29  ;;  %v360_v38 = vor.u32 %v359_v30, %v358_v11  ;;  %v363_v39 = vshll.u32 %v362_v31, 23  ;;  %v401_v51 = vsel %vm400_vm8, %v399_v27, 0 }
  0xd2   : > { %v658_v44 = vadd.s32 536870912, %v657_v37  ;;  %v403_v49 = vand.u32 31, %v401_v51  ;;  %vm599_vm9 = vcmp.lt.s32.totalorder %v2322_v36, 0  ;;  %v2507_v45 = vand.u32 3, %v378_v42 }
  0xd3   : > { %v578_v54 = vsel %vm495_vm13, %v577_v32, %v576_v29  ;;  %v364_v48 = vor.u32 4788187, %v363_v39  ;;  %v367_v41 = vcvt.s32.f32 %v360_v38  ;;  %v397_v3 = vor.u32 8388608, %v396_v19 }
  0xd4   : > { %v581_v28 = vsel %vm2444_vm1, %v2307_v23, %v578_v54  ;;  %v659_v43 = vshrl.u32 %v658_v44, 30  ;;  %v404_v60 = vsub.s32 32, %v403_v49  ;;  %v2512_v5 = vadd.f32 %v2302_v18, %v2415_v52 }
  0xd5   : > { %2180 = vcosq.f32 %v581_v28  ;;  %v365_v40 = vand.u32 2147483647, %v364_v48  ;;  %v2515_v6 = vadd.s32 %v2473_v4, %v2480_v57  ;;  %vm592_vm10 = vcmp.eq.s32.totalorder %v2504_v56, 2 }
  0xd6   : > { %2182 = vsinq.f32 %v581_v28  ;;  %v660_v0 = vshll.u32 %v659_v43, 30  ;;  %v407_v58 = vshrl.u32 %v2258_v59, %v404_v60  ;;  %v410_v7 = vshrl.u32 %v2259_v61, %v404_v60 }
  0xd7   : > { %v368_v50 = vmul.f32 %v367_v41, %v365_v40  ;;  %v413_v9 = vshrl.u32 %v2260_v63, %v404_v60  ;;  %v2522_v10 = vshrl.u32 %v401_v51, 5  ;;  %v406_v12 = vshll.u32 %v2257_v55, %v403_v49 }
  0xd8   : > { %v2520_v62 = vsub.s32 %v657_v37, %v660_v0  ;;  %v416_v13 = vshrl.u32 %v2261_v1, %v404_v60  ;;  %vm589_vm11 = vcmp.eq.s32.totalorder %v2504_v56, 0  ;;  %v683_v14 = vsub.s32 4, %v659_v43 }
  0xd9   : > { %v369_v52 = vxor.u32 2147483648, %v368_v50  ;;  %v409_v4 = vshll.u32 %v2258_v59, %v403_v49  ;;  %v412_v57 = vshll.u32 %v2259_v61, %v403_v49  ;;  %vm1949_vm12 = vcmask 261120  }
  0xda   : > { %vm588_vm13 = vcmp.lt.s32.totalorder %v2504_v56, 2  ;;  %v663_v15 = vsub.s32 0, %v2520_v62  ;;  %v408_v20 = vor.u32 %v407_v58, %v406_v12  ;;  %v415_v22 = vshll.u32 %v2260_v63, %v403_v49 }
  0xdb   : > { %v2532_v2 = vshll.u32 %v397_v3, 8  ;;  %vm585_vm15 = vweird.f32 %v2307_v23  ;;  %v370_v25 = vsel %vm287_vm14, %v369_v52, %v368_v50  ;;  %v411_v29 = vor.u32 %v410_v7, %v409_v4 }
  0xdc   : > { %v414_v21 = vor.u32 %v413_v9, %v412_v57  ;;  %v419_v27 = vshrl.u32 %v2262_v8, %v404_v60  ;;  %v373_v11 = vsel %vm2453_vm4, %v2310_v24, %v370_v25  ;;  %v2046_v30 = vmin.u32 %v663_v15, %v2520_v62 }
  0xdd   : > { %v417_v31 = vor.u32 %v416_v13, %v415_v22  ;;  %v418_v16 = vshll.u32 %v2261_v1, %v403_v49  ;;  %2184 = vcosq.f32 %v373_v11  ;;  %v684_v32 = vsel %vm599_vm9, %v683_v14, %v659_v43 }
  0xde   : > { %v405_v33 = vshrl.u32 %v2257_v55, %v404_v60  ;;  %vm421_vm14 = vcmp.lt.s32.totalorder %v2522_v10, 1  ;;  %2186 = vsinq.f32 %v373_v11  ;;  %vm2549_vm0 = vcmp.le.f32.partialorder %v597_v53, 0.7853982 }
  0xdf   : > { %v2181_v37 = vpop.eup %2180  ;;  %v665_v26 = vclz %v2046_v30  ;;  %v420_v38 = vor.u32 %v419_v27, %v418_v16  ;;  %vm422_vm1 = vcmp.lt.s32.totalorder %v2522_v10, 2  ;;  %vm423_vm2 = vcmp.lt.s32.totalorder %v2522_v10, 3 }
  0xe0   : > { %v2183_v39 = vpop.eup %2182  ;;  %v593_v42 = vxor.u32 2147483648, %v2181_v37  ;;  %vm424_vm3 = vcmp.lt.s32.totalorder %v2522_v10, 4  ;;  %v429_v51 = vsel %vm421_vm14, %v408_v20, %v411_v29  ;;  %v425_v28 = vsel %vm421_vm14, %v405_v33, %v408_v20 }
  0xe1   : > { %v590_v54 = vxor.u32 2147483648, %v2183_v39  ;;  %v2047_v44 = vadd.s32 4294967294, %v665_v26  ;;  %v426_v53 = vsel %vm424_vm3, %v414_v21, 2102212464  ;;  %v430_v19 = vsel %vm424_vm3, %v417_v31, 920167782 }
  0xe2   : > { %v594_v49 = vsel %vm592_vm10, %v593_v42, %v2183_v39  ;;  %v431_v48 = vsel %vm423_vm2, %v414_v21, %v430_v19  ;;  %v433_v43 = vsel %vm421_vm14, %v411_v29, %v414_v21  ;;  %v434_v41 = vsel %vm424_vm3, %v420_v38, 1326507024 }
  0xe3   : > { %v591_v60 = vsel %vm589_vm11, %v2181_v37, %v590_v54  ;;  %vm2048_vm4 = vcmp.lt.s32.totalorder %v2047_v44, 0  ;;  %v432_v40 = vsel %vm422_vm1, %v429_v51, %v431_v48  ;;  %v427_v58 = vsel %vm423_vm2, %v411_v29, %v426_v53 }
  0xe4   : > { %v595_v0 = vsel %vm588_vm13, %v591_v60, %v594_v49  ;;  %v668_v3 = vsel %vm2048_vm4, 0, %v2047_v44  ;;  %v435_v50 = vsel %vm423_vm2, %v417_v31, %v434_v41  ;;  %vm377_vm5 = vweird.f32 %v2310_v24 }
  0xe5   : > { %v596_v7 = vsel %vm585_vm15, nan, %v595_v0  ;;  %v669_v9 = vsub.s32 32, %v668_v3  ;;  %v670_v12 = vshll.u32 %v2520_v62, %v668_v3  ;;  %v673_v13 = vsub.s32 4294967266, %v668_v3 }
  0xe6   : > { %1952 = vst.msk [vmem:[%s2571_s22 + $0x10] sm:$0xff] %vm1949_vm12, %v596_v7  ;;  %v436_v56 = vsel %vm422_vm1, %v433_v43, %v435_v50  ;;  %v2592_v52 = vmul.u32.u64.low %v2532_v2, %v432_v40  ;;  %v2593_v14 = vmul.u32.u64.high %v2532_v2, %v432_v40, %v2592_v52  ;;  %v808_v4 = vand.u32 2139095040, %v2512_v5 }
  0xe7   : > { %v671_v23 = vshrl.u32 %v2515_v6, %v669_v9  ;;  %v674_v57 = vadd.s32 127, %v673_v13  ;;  %v2599_v15 = vmul.u32.u64.low %v2532_v2, %v436_v56  ;;  %v2600_v20 = vmul.u32.u64.high %v2532_v2, %v436_v56, %v2599_v15  ;;  %v2185_v62 = vpop.eup %2184 }
  0xe8   : > { %vm380_vm6 = vcmp.lt.s32.totalorder %v2507_v45, 2  ;;  %vm384_vm7 = vcmp.eq.s32.totalorder %v2507_v45, 2  ;;  %v686_v22 = vsel %vm2549_vm0, 0, %v684_v32  ;;  %v809_v25 = vshrl.u32 %v808_v4, 23  ;;  %v2187_v29 = vpop.eup %2186 }
  0xe9   : > { %v385_v21 = vxor.u32 2147483648, %v2185_v62  ;;  %v672_v27 = vor.u32 %v671_v23, %v670_v12  ;;  %v675_v11 = vshll.u32 %v674_v57, 23  ;;  %v428_v6 = vsel %vm422_vm1, %v425_v28, %v427_v58 }
  0xea   : > { %v382_v30 = vxor.u32 2147483648, %v2187_v29  ;;  %v447_v31 = vadd.s32 1, %v2593_v14  ;;  %v805_v16 = vand.u32 2147483647, %v2512_v5  ;;  %v2053_v33 = vadd.s32 4294967169, %v809_v25 }
  0xeb   : > { %vm381_vm8 = vcmp.eq.s32.totalorder %v2507_v45, 0  ;;  %v386_v37 = vsel %vm384_vm7, %v385_v21, %v2187_v29  ;;  %v676_v26 = vor.u32 4788187, %v675_v11  ;;  %v690_v32 = vadd.s32 3, %v686_v22 }
  0xec   : > { %v383_v38 = vsel %vm381_vm8, %v2185_v62, %v382_v30  ;;  %v444_v39 = vmul.u32 %v2532_v2, %v428_v6  ;;  %vm446_vm10 = vc.u32 %v2600_v20, %v2592_v52  ;;  %v815_v10 = vadd.s32 1, %v2053_v33 }
  0xed   : > { %v387_v42 = vsel %vm380_vm6, %v383_v38, %v386_v37  ;;  %v677_v51 = vand.u32 2147483647, %v676_v26  ;;  %v679_v54 = vcvt.s32.f32 %v672_v27  ;;  %v448_v44 = vsel %vm446_vm10, %v447_v31, %v2593_v14 }
  0xee   : > { %v388_v53 = vsel %vm377_vm5, nan, %v387_v42  ;;  %v449_v19 = vadd.s32 %v448_v44, %v444_v39  ;;  %v812_v49 = vand.u32 8388607, %v805_v16  ;;  %vm816_vm11 = vcmp.gt.s32.totalorder %v815_v10, 0 }
  0xef   : > { %1950 = vst.msk [vmem:[%s2571_s22] sm:$0xff] %vm1949_vm12, %v388_v53  ;;  %v680_v2 = vmul.f32 %v679_v54, %v677_v51  ;;  %v817_v28 = vsel %vm816_vm11, %v815_v10, 0  ;;  %v2625_v45 = vadd.f32 %v2302_v18, %v2502_v46  ;;  %v2627_v40 = vand.u32 3, %v690_v32 }
  0xf0   : > { %v450_v48 = vadd.s32 536870912, %v449_v19  ;;  %v819_v43 = vand.u32 31, %v817_v28  ;;  %v813_v41 = vor.u32 8388608, %v812_v49  ;;  %v2633_v58 = vshrl.u32 %v817_v28, 5 }
  0xf1   : > { %v681_v60 = vxor.u32 2147483648, %v680_v2  ;;  %v704_v7 = vand.u32 2139095040, %v2625_v45  ;;  %v445_v11 = vadd.s32 %v2592_v52, %v2600_v20  ;;  %v701_v30 = vand.u32 2147483647, %v2625_v45 }
  0xf2   : > { %v2629_v24 = vshrl.u32 %v450_v48, 30  ;;  %v820_v0 = vsub.s32 32, %v819_v43  ;;  %v822_v50 = vshll.u32 %v2257_v55, %v819_v43  ;;  %v825_v12 = vshll.u32 %v2258_v59, %v819_v43 }
  0xf3   : > { %v682_v3 = vsel %vm599_vm9, %v681_v60, %v680_v2  ;;  %v828_v13 = vshll.u32 %v2259_v61, %v819_v43  ;;  %v831_v57 = vshll.u32 %v2260_v63, %v819_v43  ;;  %v834_v22 = vshll.u32 %v2261_v1, %v819_v43 }
  0xf4   : > { %v685_v46 = vsel %vm2549_vm0, %v2322_v36, %v682_v3  ;;  %v452_v9 = vshll.u32 %v2629_v24, 30  ;;  %v823_v56 = vshrl.u32 %v2258_v59, %v820_v0  ;;  %v826_v14 = vshrl.u32 %v2259_v61, %v820_v0 }
  0xf5   : > { %2188 = vcosq.f32 %v685_v46  ;;  %v829_v4 = vshrl.u32 %v2260_v63, %v820_v0  ;;  %v832_v34 = vshrl.u32 %v2261_v1, %v820_v0  ;;  %v835_v27 = vshrl.u32 %v2262_v8, %v820_v0 }
  0xf6   : > { %2190 = vsinq.f32 %v685_v46  ;;  %v2646_v23 = vsub.s32 %v449_v19, %v452_v9  ;;  %v824_v15 = vor.u32 %v823_v56, %v822_v50  ;;  %v827_v62 = vor.u32 %v826_v14, %v825_v12 }
  0xf7   : > { %v830_v29 = vor.u32 %v829_v4, %v828_v13  ;;  %v833_v21 = vor.u32 %v832_v34, %v831_v57  ;;  %vm696_vm9 = vcmp.eq.s32.totalorder %v2627_v40, 2  ;;  %v2656_v6 = vshll.u32 %v813_v41, 8 }
  0xf8   : > { %v455_v25 = vsub.s32 0, %v2646_v23  ;;  %v705_v31 = vshrl.u32 %v704_v7, 23  ;;  %vm693_vm13 = vcmp.eq.s32.totalorder %v2627_v40, 0  ;;  %vm391_vm15 = vcmp.lt.s32.totalorder %v2402_v35, 0 }
  0xf9   : > { %v836_v37 = vor.u32 %v835_v27, %v834_v22  ;;  %vm837_vm14 = vcmp.lt.s32.totalorder %v2633_v58, 1  ;;  %vm840_vm0 = vcmp.lt.s32.totalorder %v2633_v58, 4  ;;  %vm692_vm1 = vcmp.lt.s32.totalorder %v2627_v40, 2 }
  0xfa   : > { %v2038_v33 = vmin.u32 %v455_v25, %v2646_v23  ;;  %v475_v52 = vsub.s32 4, %v2629_v24  ;;  %v821_v20 = vshrl.u32 %v2257_v55, %v820_v0  ;;  %v845_v26 = vsel %vm837_vm14, %v824_v15, %v827_v62 }
  0xfb   : > { %v846_v32 = vsel %vm840_vm0, %v833_v21, 920167782  ;;  %vm689_vm2 = vweird.f32 %v2322_v36  ;;  %vm839_vm3 = vcmp.lt.s32.totalorder %v2633_v58, 3  ;;  %v842_v39 = vsel %vm840_vm0, %v830_v29, 2102212464 }
  0xfc   : > { %v457_v38 = vclz %v2038_v33  ;;  %v849_v10 = vsel %vm837_vm14, %v827_v62, %v830_v29  ;;  %vm838_vm4 = vcmp.lt.s32.totalorder %v2633_v58, 2  ;;  %v847_v42 = vsel %vm839_vm3, %v830_v29, %v846_v32 }
  0xfd   : > { %v850_v51 = vsel %vm840_vm0, %v836_v37, 1326507024  ;;  %v2049_v54 = vadd.s32 4294967169, %v705_v31  ;;  %v841_v53 = vsel %vm837_vm14, %v821_v20, %v824_v15  ;;  %v848_v19 = vsel %vm838_vm4, %v845_v26, %v847_v42 }
  0xfe   : > { %v2039_v44 = vadd.s32 4294967294, %v457_v38  ;;  %v851_v49 = vsel %vm839_vm3, %v833_v21, %v850_v51  ;;  %v843_v28 = vsel %vm839_vm3, %v827_v62, %v842_v39  ;;  %v2691_v9 = vand.u32 8388607, %v701_v30 }
  0xff   : > { %v2189_v2 = vpop.eup %2188  ;;  %v852_v48 = vsel %vm838_vm4, %v849_v10, %v851_v49  ;;  %v2681_v43 = vmul.u32.u64.low %v2656_v6, %v848_v19  ;;  %v2682_v60 = vmul.u32.u64.high %v2656_v6, %v848_v19, %v2681_v43  ;;  %v711_v12 = vadd.s32 1, %v2049_v54  ;;  %v198_v54 = vpop.permute.xlu0 %197 }
 0x100   : > { %v2191_v41 = vpop.eup %2190  ;;  %v697_v0 = vxor.u32 2147483648, %v2189_v2  ;;  %vm2040_vm5 = vcmp.lt.s32.totalorder %v2039_v44, 0  ;;  %v2686_v3 = vmul.u32.u64.low %v2656_v6, %v852_v48  ;;  %v2687_v50 = vmul.u32.u64.high %v2656_v6, %v852_v48, %v2686_v3 }
 0x101   : > { %v694_v7 = vxor.u32 2147483648, %v2191_v41  ;;  %v460_v46 = vsel %vm2040_vm5, 0, %v2039_v44  ;;  %v844_v4 = vsel %vm838_vm4, %v841_v53, %v843_v28  ;;  %v476_v34 = vsel %vm391_vm15, %v475_v52, %v2629_v24  ;;  %v203_v24 = vpop.permute.xlu1 %202 }
 0x102   : > { %v698_v13 = vsel %vm696_vm9, %v697_v0, %v2191_v41  ;;  %v461_v56 = vsub.s32 32, %v460_v46  ;;  %v465_v14 = vsub.s32 4294967266, %v460_v46  ;;  %v863_v15 = vadd.s32 1, %v2682_v60 }
 0x103   : > { %v695_v57 = vsel %vm693_vm13, %v2189_v2, %v694_v7  ;;  %vm712_vm6 = vcmp.gt.s32.totalorder %v711_v12, 0  ;;  %v462_v22 = vshll.u32 %v2646_v23, %v460_v46  ;;  %v860_v21 = vmul.u32 %v2656_v6, %v844_v4 }
 0x104   : > { %v699_v62 = vsel %vm692_vm1, %v695_v57, %v698_v13  ;;  %v463_v25 = vshrl.u32 %v445_v11, %v461_v56  ;;  %v466_v29 = vadd.s32 127, %v465_v14  ;;  %vm862_vm7 = vc.u32 %v2687_v50, %v2681_v43 }
 0x105   : > { %v700_v58 = vsel %vm689_vm2, nan, %v699_v62  ;;  %v713_v27 = vsel %vm712_vm6, %v711_v12, 0  ;;  %v864_v40 = vsel %vm862_vm7, %v863_v15, %v2682_v60  ;;  %vm2716_vm8 = vcmp.le.f32.partialorder %v389_v47, 0.7853982 }
 0x106   : > { %1953 = vst.msk [vmem:[%s2571_s22 + $0x18] sm:$0xff] %vm1949_vm12, %v700_v58  ;;  %v464_v31 = vor.u32 %v463_v25, %v462_v22  ;;  %v467_v33 = vshll.u32 %v466_v29, 23  ;;  %v865_v36 = vadd.s32 %v864_v40, %v860_v21  ;;  %v715_v11 = vand.u32 31, %v713_v27 }
 0x107   : > { %v478_v37 = vsel %vm2716_vm8, 0, %v476_v34  ;;  %v709_v52 = vor.u32 8388608, %v2691_v9  ;;  %v256_v20 = vmul.f32 %v2297_v17, %v203_v24  ;;  %v714_v38 = vshrl.u32 %v713_v27, 5 }
 0x108   : > { %v468_v6 = vor.u32 4788187, %v467_v33  ;;  %v471_v26 = vcvt.s32.f32 %v464_v31  ;;  %v866_v32 = vadd.s32 536870912, %v865_v36  ;;  %v716_v39 = vsub.s32 32, %v715_v11 }
 0x109   : > { %v718_v47 = vshll.u32 %v2257_v55, %v715_v11  ;;  %v721_v42 = vshll.u32 %v2258_v59, %v715_v11  ;;  %v724_v51 = vshll.u32 %v2259_v61, %v715_v11  ;;  %v727_v49 = vshll.u32 %v2260_v63, %v715_v11 }
 0x10a   : > { %v469_v10 = vand.u32 2147483647, %v468_v6  ;;  %v867_v44 = vshrl.u32 %v866_v32, 30  ;;  %v719_v53 = vshrl.u32 %v2258_v59, %v716_v39  ;;  %v722_v19 = vshrl.u32 %v2259_v61, %v716_v39 }
 0x10b   : > { %v725_v28 = vshrl.u32 %v2260_v63, %v716_v39  ;;  %v728_v48 = vshrl.u32 %v2261_v1, %v716_v39  ;;  %v731_v60 = vshrl.u32 %v2262_v8, %v716_v39  ;;  %v730_v3 = vshll.u32 %v2261_v1, %v715_v11 }
 0x10c   : > { %v472_v2 = vmul.f32 %v471_v26, %v469_v10  ;;  %v868_v41 = vshll.u32 %v867_v44, 30  ;;  %v720_v0 = vor.u32 %v719_v53, %v718_v47  ;;  %v2735_v7 = vmul.f32 %v2297_v17, %v198_v54 }
 0x10d   : > { %vm807_vm10 = vcmp.lt.s32.totalorder %v2512_v5, 0  ;;  %v723_v9 = vor.u32 %v722_v19, %v721_v42  ;;  %v726_v12 = vor.u32 %v725_v28, %v724_v51  ;;  %v729_v13 = vor.u32 %v728_v48, %v727_v49 }
 0x10e   : > { %v473_v46 = vxor.u32 2147483648, %v472_v2  ;;  %v482_v56 = vadd.s32 3, %v478_v37  ;;  %v2738_v14 = vsub.s32 %v865_v36, %v868_v41  ;;  %vm733_vm11 = vcmp.lt.s32.totalorder %v714_v38, 1 }
 0x10f   : > { %v2741_v4 = vadd.f32 %v2302_v18, %v256_v20  ;;  %v717_v34 = vshrl.u32 %v2257_v55, %v716_v39  ;;  %v732_v17 = vor.u32 %v731_v60, %v730_v3  ;;  %vm734_vm9 = vcmp.lt.s32.totalorder %v714_v38, 2 }
 0x110   : > { %v474_v57 = vsel %vm391_vm15, %v473_v46, %v472_v2  ;;  %v871_v62 = vsub.s32 0, %v2738_v14  ;;  %vm735_vm13 = vcmp.lt.s32.totalorder %v714_v38, 3  ;;  %vm736_vm14 = vcmp.lt.s32.totalorder %v714_v38, 4 }
 0x111   : > { %v477_v15 = vsel %vm2716_vm8, %v2402_v35, %v474_v57  ;;  %vm2752_vm0 = vcmp.le.f32.partialorder %v805_v16, 0.7853982  ;;  %v738_v22 = vsel %vm736_vm14, %v726_v12, 2102212464  ;;  %v741_v25 = vsel %vm733_vm11, %v720_v0, %v723_v9 }
 0x112   : > { %2192 = vcosq.f32 %v477_v15  ;;  %v742_v29 = vsel %vm736_vm14, %v729_v13, 920167782  ;;  %v2054_v58 = vmin.u32 %v871_v62, %v2738_v14  ;;  %v891_v21 = vsub.s32 4, %v867_v44 }
 0x113   : > { %2194 = vsinq.f32 %v477_v15  ;;  %v743_v27 = vsel %vm735_vm13, %v726_v12, %v742_v29  ;;  %v745_v31 = vsel %vm733_vm11, %v723_v9, %v726_v12  ;;  %v746_v33 = vsel %vm736_vm14, %v732_v17, 1326507024 }
 0x114   : > { %v744_v24 = vsel %vm734_vm9, %v741_v25, %v743_v27  ;;  %v749_v40 = vshll.u32 %v709_v52, 8  ;;  %v483_v16 = vand.u32 3, %v482_v56  ;;  %v873_v23 = vclz %v2054_v58 }
 0x115   : > { %v737_v36 = vsel %vm733_vm11, %v717_v34, %v720_v0  ;;  %v739_v11 = vsel %vm735_vm13, %v723_v9, %v738_v22  ;;  %v747_v6 = vsel %vm735_vm13, %v729_v13, %v746_v33  ;;  %v1016_v26 = vand.u32 2139095040, %v2741_v4 }
 0x116   : > { %v2764_v37 = vmul.u32.u64.low %v749_v40, %v744_v24  ;;  %v2765_v20 = vmul.u32.u64.high %v749_v40, %v744_v24, %v2764_v37  ;;  %v2055_v32 = vadd.s32 4294967294, %v873_v23  ;;  %v892_v39 = vsel %vm807_vm10, %v891_v21, %v867_v44 }
 0x117   : > { %v748_v52 = vsel %vm734_vm9, %v745_v31, %v747_v6  ;;  %v1013_v10 = vand.u32 2147483647, %v2741_v4  ;;  %v740_v47 = vsel %vm734_vm9, %v737_v36, %v739_v11  ;;  %v1017_v54 = vshrl.u32 %v1016_v26, 23  ;;  %v2799_v36 = vld [vmem:[%s3569_s1 + $0x1] ss:$0 sm:$0xff] }
 0x118   : > { %v2774_v42 = vmul.u32.u64.low %v749_v40, %v748_v52  ;;  %v2775_v51 = vmul.u32.u64.high %v749_v40, %v748_v52, %v2774_v42  ;;  %vm484_vm15 = vcmp.lt.s32.totalorder %v483_v16, 2  ;;  %vm485_vm1 = vcmp.eq.s32.totalorder %v483_v16, 0 }
 0x119   : > { %vm488_vm2 = vcmp.eq.s32.totalorder %v483_v16, 2  ;;  %vm2056_vm3 = vcmp.lt.s32.totalorder %v2055_v32, 0  ;;  %v861_v53 = vadd.s32 %v2681_v43, %v2687_v50  ;;  %v759_v44 = vadd.s32 1, %v2765_v20 }
 0x11a   : > { %v876_v19 = vsel %vm2056_vm3, 0, %v2055_v32  ;;  %v2061_v49 = vadd.s32 4294967169, %v1017_v54  ;;  %v894_v38 = vsel %vm2752_vm0, 0, %v892_v39  ;;  %v756_v48 = vmul.u32 %v749_v40, %v740_v47 }
 0x11b   : > { %v877_v2 = vsub.s32 32, %v876_v19  ;;  %v881_v28 = vsub.s32 4294967266, %v876_v19  ;;  %v878_v41 = vshll.u32 %v2738_v14, %v876_v19  ;;  %vm758_vm4 = vc.u32 %v2775_v51, %v2764_v37 }
 0x11c   : > { %v2193_v60 = vpop.eup %2192  ;;  %v1020_v0 = vand.u32 8388607, %v1013_v10  ;;  %v1023_v43 = vadd.s32 1, %v2061_v49  ;;  %v760_v12 = vsel %vm758_vm4, %v759_v44, %v2765_v20  ;;  %v898_v56 = vadd.s32 3, %v894_v38 }
 0x11d   : > { %v2195_v50 = vpop.eup %2194  ;;  %v489_v3 = vxor.u32 2147483648, %v2193_v60  ;;  %v879_v46 = vshrl.u32 %v861_v53, %v877_v2  ;;  %v882_v9 = vadd.s32 127, %v881_v28  ;;  %v761_v57 = vadd.s32 %v760_v12, %v756_v48 }
 0x11e   : > { %v486_v13 = vxor.u32 2147483648, %v2195_v50  ;;  %vm1024_vm5 = vcmp.gt.s32.totalorder %v1023_v43, 0  ;;  %v1021_v25 = vor.u32 8388608, %v1020_v0  ;;  %vm481_vm6 = vweird.f32 %v2402_v35 }
 0x11f   : > { %v490_v14 = vsel %vm488_vm2, %v489_v3, %v2195_v50  ;;  %v880_v34 = vor.u32 %v879_v46, %v878_v41  ;;  %v883_v17 = vshll.u32 %v882_v9, 23  ;;  %v1025_v15 = vsel %vm1024_vm5, %v1023_v43, 0 }
 0x120   : > { %v487_v62 = vsel %vm485_vm1, %v2193_v60, %v486_v13  ;;  %v762_v22 = vadd.s32 536870912, %v761_v57  ;;  %v1027_v29 = vand.u32 31, %v1025_v15  ;;  %v2794_v23 = vand.u32 3, %v898_v56 }
 0x121   : > { %v491_v58 = vsel %vm484_vm15, %v487_v62, %v490_v14  ;;  %v884_v21 = vor.u32 4788187, %v883_v17  ;;  %v887_v40 = vcvt.s32.f32 %v880_v34  ;;  %v2803_v35 = vadd.f32 %v2799_v36, %v2735_v7 }
 0x122   : > { %v492_v27 = vsel %vm481_vm6, nan, %v491_v58  ;;  %v763_v24 = vshrl.u32 %v762_v22, 30  ;;  %v1028_v31 = vsub.s32 32, %v1027_v29  ;;  %v1030_v11 = vshll.u32 %v2257_v55, %v1027_v29 }
 0x123   : > { %1951 = vst.msk [vmem:[%s2571_s22 + $0x8] sm:$0xff] %vm1949_vm12, %v492_v27  ;;  %v885_v33 = vand.u32 2147483647, %v884_v21  ;;  %v2807_v20 = vshll.u32 %v1021_v25, 8  ;;  %v757_v47 = vadd.s32 %v2764_v37, %v2775_v51  ;;  %v1026_v7 = vshrl.u32 %v1025_v15, 5 }
 0x124   : > { %v764_v16 = vshll.u32 %v763_v24, 30  ;;  %v1031_v6 = vshrl.u32 %v2258_v59, %v1028_v31  ;;  %v1034_v32 = vshrl.u32 %v2259_v61, %v1028_v31  ;;  %v1037_v39 = vshrl.u32 %v2260_v63, %v1028_v31 }
 0x125   : > { %v888_v26 = vmul.f32 %v887_v40, %v885_v33  ;;  %v1040_v52 = vshrl.u32 %v2261_v1, %v1028_v31  ;;  %v1033_v54 = vshll.u32 %v2258_v59, %v1027_v29  ;;  %v1036_v44 = vshll.u32 %v2259_v61, %v1027_v29 }
 0x126   : > { %v2814_v42 = vsub.s32 %v761_v57, %v764_v16  ;;  %v1032_v19 = vor.u32 %v1031_v6, %v1030_v11  ;;  %v1039_v49 = vshll.u32 %v2260_v63, %v1027_v29  ;;  %vm703_vm7 = vcmp.lt.s32.totalorder %v2625_v45, 0 }
 0x127   : > { %v889_v53 = vxor.u32 2147483648, %v888_v26  ;;  %v1035_v28 = vor.u32 %v1034_v32, %v1033_v54  ;;  %v1042_v38 = vshll.u32 %v2261_v1, %v1027_v29  ;;  %v1043_v37 = vshrl.u32 %v2262_v8, %v1028_v31 }
 0x128   : > { %v767_v2 = vsub.s32 0, %v2814_v42  ;;  %v1038_v48 = vor.u32 %v1037_v39, %v1036_v44  ;;  %v1041_v60 = vor.u32 %v1040_v52, %v1039_v49  ;;  %v912_v41 = vand.u32 2139095040, %v2803_v35 }
 0x129   : > { %v890_v51 = vsel %vm807_vm10, %v889_v53, %v888_v26  ;;  %v787_v50 = vsub.s32 4, %v763_v24  ;;  %v1044_v3 = vor.u32 %v1043_v37, %v1042_v38  ;;  %v1029_v46 = vshrl.u32 %v2257_v55, %v1028_v31 }
 0x12a   : > { %v893_v0 = vsel %vm2752_vm0, %v2512_v5, %v890_v51  ;;  %v2050_v43 = vmin.u32 %v767_v2, %v2814_v42  ;;  %vm1045_vm8 = vcmp.lt.s32.totalorder %v1026_v7, 1  ;;  %vm1046_vm11 = vcmp.lt.s32.totalorder %v1026_v7, 2 }
 0x12b   : > { %2196 = vcosq.f32 %v893_v0  ;;  %vm1048_vm10 = vcmp.lt.s32.totalorder %v1026_v7, 4  ;;  %v1053_v12 = vsel %vm1045_vm8, %v1032_v19, %v1035_v28  ;;  %vm1047_vm9 = vcmp.lt.s32.totalorder %v1026_v7, 3 }
 0x12c   : > { %2198 = vsinq.f32 %v893_v0  ;;  %v769_v9 = vclz %v2050_v43  ;;  %v1050_v13 = vsel %vm1048_vm10, %v1038_v48, 2102212464  ;;  %v1054_v56 = vsel %vm1048_vm10, %v1041_v60, 920167782 }
 0x12d   : > { %v1057_v57 = vsel %vm1045_vm8, %v1035_v28, %v1038_v48  ;;  %v1049_v18 = vsel %vm1045_vm8, %v1029_v46, %v1032_v19  ;;  %v1055_v34 = vsel %vm1047_vm9, %v1038_v48, %v1054_v56  ;;  %v1058_v17 = vsel %vm1048_vm10, %v1044_v3, 1326507024  ;;  %v2868_v3 = vld [vmem:[%s3569_s1] ss:$0 sm:$0xff] }
 0x12e   : > { %v2051_v14 = vadd.s32 4294967294, %v769_v9  ;;  %v1051_v15 = vsel %vm1047_vm9, %v1035_v28, %v1050_v13  ;;  %v1056_v62 = vsel %vm1046_vm11, %v1053_v12, %v1055_v34  ;;  %v1059_v22 = vsel %vm1047_vm9, %v1041_v60, %v1058_v17  ;;  %v213_v28 = vpop.permute.xlu1 %212  ;;  %v208_v9 = vpop.permute.xlu0 %207 }
 0x12f   : > { %v913_v25 = vshrl.u32 %v912_v41, 23  ;;  %v1060_v29 = vsel %vm1046_vm11, %v1057_v57, %v1059_v22  ;;  %v2834_v58 = vmul.u32.u64.low %v2807_v20, %v1056_v62  ;;  %v2835_v21 = vmul.u32.u64.high %v2807_v20, %v1056_v62, %v2834_v58 }
 0x130   : > { %vm2052_vm13 = vcmp.lt.s32.totalorder %v2051_v14, 0  ;;  %v788_v31 = vsel %vm703_vm7, %v787_v50, %v763_v24  ;;  %v2841_v33 = vmul.u32.u64.low %v2807_v20, %v1060_v29  ;;  %v2842_v40 = vmul.u32.u64.high %v2807_v20, %v1060_v29, %v2841_v33 }
 0x131   : > { %v772_v27 = vsel %vm2052_vm13, 0, %v2051_v14  ;;  %v1052_v6 = vsel %vm1046_vm11, %v1049_v18, %v1051_v15  ;;  %v2057_v26 = vadd.s32 4294967169, %v913_v25  ;;  %vm900_vm14 = vcmp.lt.s32.totalorder %v2794_v23, 2 }
 0x132   : > { %v773_v16 = vsub.s32 32, %v772_v27  ;;  %v777_v11 = vsub.s32 4294967266, %v772_v27  ;;  %vm901_vm0 = vcmp.eq.s32.totalorder %v2794_v23, 0  ;;  %vm2849_vm15 = vcmp.le.f32.partialorder %v701_v30, 0.7853982 }
 0x133   : > { %v774_v24 = vshll.u32 %v2814_v42, %v772_v27  ;;  %v1071_v54 = vadd.s32 1, %v2835_v21  ;;  %v919_v53 = vadd.s32 1, %v2057_v26  ;;  %vm904_vm1 = vcmp.eq.s32.totalorder %v2794_v23, 2 }
 0x134   : > { %v775_v39 = vshrl.u32 %v757_v47, %v773_v16  ;;  %v778_v52 = vadd.s32 127, %v777_v11  ;;  %v790_v19 = vsel %vm2849_vm15, 0, %v788_v31  ;;  %v1068_v44 = vmul.u32 %v2807_v20, %v1052_v6 }
 0x135   : > { %v2197_v7 = vpop.eup %2196  ;;  %vm1070_vm2 = vc.u32 %v2842_v40, %v2834_v58  ;;  %v909_v51 = vand.u32 2147483647, %v2803_v35  ;;  %vm920_vm3 = vcmp.gt.s32.totalorder %v919_v53, 0  ;;  %v794_v41 = vadd.s32 3, %v790_v19 }
 0x136   : > { %v2199_v30 = vpop.eup %2198  ;;  %v905_v49 = vxor.u32 2147483648, %v2197_v7  ;;  %v776_v2 = vor.u32 %v775_v39, %v774_v24  ;;  %v779_v42 = vshll.u32 %v778_v52, 23  ;;  %v1072_v47 = vsel %vm1070_vm2, %v1071_v54, %v2835_v21 }
 0x137   : > { %v902_v38 = vxor.u32 2147483648, %v2199_v30  ;;  %v1073_v37 = vadd.s32 %v1072_v47, %v1068_v44  ;;  %v921_v20 = vsel %vm920_vm3, %v919_v53, 0  ;;  %v258_v46 = vmul.f32 %v2868_v3, %v213_v28 }
 0x138   : > { %v906_v48 = vsel %vm904_vm1, %v905_v49, %v2199_v30  ;;  %v780_v60 = vor.u32 4788187, %v779_v42  ;;  %v923_v50 = vand.u32 31, %v921_v20  ;;  %vm897_vm4 = vweird.f32 %v2512_v5 }
 0x139   : > { %v903_v0 = vsel %vm901_vm0, %v2197_v7, %v902_v38  ;;  %v1074_v43 = vadd.s32 536870912, %v1073_v37  ;;  %v783_v56 = vcvt.s32.f32 %v776_v2  ;;  %v916_v18 = vand.u32 8388607, %v909_v51 }
 0x13a   : > { %v907_v12 = vsel %vm900_vm14, %v903_v0, %v906_v48  ;;  %v781_v13 = vand.u32 2147483647, %v780_v60  ;;  %v924_v34 = vsub.s32 32, %v923_v50  ;;  %v2878_v15 = vand.u32 3, %v794_v41 }
 0x13b   : > { %v908_v57 = vsel %vm897_vm4, nan, %v907_v12  ;;  %v1075_v14 = vshrl.u32 %v1074_v43, 30  ;;  %v2881_v62 = vmul.f32 %v2868_v3, %v208_v9  ;;  %v926_v23 = vshll.u32 %v2257_v55, %v923_v50 }
 0x13c   : > { %1955 = vst.msk [vmem:[%s2571_s22 + $0x28] sm:$0xff] %vm1949_vm12, %v908_v57  ;;  %v784_v17 = vmul.f32 %v783_v56, %v781_v13  ;;  %v927_v22 = vshrl.u32 %v2258_v59, %v924_v34  ;;  %v2886_v25 = vadd.f32 %v2799_v36, %v258_v46  ;;  %v930_v21 = vshrl.u32 %v2259_v61, %v924_v34 }
 0x13d   : > { %v1076_v5 = vshll.u32 %v1075_v14, 30  ;;  %v933_v27 = vshrl.u32 %v2260_v63, %v924_v34  ;;  %v936_v31 = vshrl.u32 %v2261_v1, %v924_v34  ;;  %v917_v16 = vor.u32 8388608, %v916_v18 }
 0x13e   : > { %v785_v29 = vxor.u32 2147483648, %v784_v17  ;;  %v922_v11 = vshrl.u32 %v921_v20, 5  ;;  %v929_v6 = vshll.u32 %v2258_v59, %v923_v50  ;;  %vm1015_vm5 = vcmp.lt.s32.totalorder %v2741_v4, 0 }
 0x13f   : > { %v2891_v33 = vsub.s32 %v1073_v37, %v1076_v5  ;;  %v928_v24 = vor.u32 %v927_v22, %v926_v23  ;;  %v932_v39 = vshll.u32 %v2259_v61, %v923_v50  ;;  %v935_v52 = vshll.u32 %v2260_v63, %v923_v50 }
 0x140   : > { %v786_v26 = vsel %vm703_vm7, %v785_v29, %v784_v17  ;;  %v931_v7 = vor.u32 %v930_v21, %v929_v6  ;;  %v938_v19 = vshll.u32 %v2261_v1, %v923_v50  ;;  %v939_v49 = vshrl.u32 %v2262_v8, %v924_v34 }
 0x141   : > { %v789_v54 = vsel %vm2849_vm15, %v2625_v45, %v786_v26  ;;  %v1079_v53 = vsub.s32 0, %v2891_v33  ;;  %v934_v44 = vor.u32 %v933_v27, %v932_v39  ;;  %v937_v30 = vor.u32 %v936_v31, %v935_v52 }
 0x142   : > { %2200 = vcosq.f32 %v789_v54  ;;  %vm2907_vm6 = vcmp.le.f32.partialorder %v1013_v10, 0.7853982  ;;  %v1099_v42 = vsub.s32 4, %v1075_v14  ;;  %v957_v47 = vshll.u32 %v917_v16, 8 }
 0x143   : > { %2202 = vsinq.f32 %v789_v54  ;;  %v2062_v32 = vmin.u32 %v1079_v53, %v2891_v33  ;;  %v925_v28 = vshrl.u32 %v2257_v55, %v924_v34  ;;  %v940_v38 = vor.u32 %v939_v49, %v938_v19 }
 0x144   : > { %vm941_vm7 = vcmp.lt.s32.totalorder %v922_v11, 1  ;;  %vm942_vm8 = vcmp.lt.s32.totalorder %v922_v11, 2  ;;  %vm943_vm11 = vcmp.lt.s32.totalorder %v922_v11, 3  ;;  %vm944_vm10 = vcmp.lt.s32.totalorder %v922_v11, 4 }
 0x145   : > { %v1081_v37 = vclz %v2062_v32  ;;  %v949_v48 = vsel %vm941_vm7, %v928_v24, %v931_v7  ;;  %v946_v60 = vsel %vm944_vm10, %v934_v44, 2102212464  ;;  %v950_v41 = vsel %vm944_vm10, %v937_v30, 920167782 }
 0x146   : > { %v953_v20 = vsel %vm941_vm7, %v931_v7, %v934_v44  ;;  %v954_v10 = vsel %vm944_vm10, %v940_v38, 1326507024  ;;  %vm797_vm9 = vcmp.eq.s32.totalorder %v2878_v15, 0  ;;  %v945_v43 = vsel %vm941_vm7, %v925_v28, %v928_v24 }
 0x147   : > { %v2063_v0 = vadd.s32 4294967294, %v1081_v37  ;;  %v951_v50 = vsel %vm943_vm11, %v934_v44, %v950_v41  ;;  %v955_v46 = vsel %vm943_vm11, %v937_v30, %v954_v10  ;;  %v947_v9 = vsel %vm943_vm11, %v931_v7, %v946_v60 }
 0x148   : > { %v952_v12 = vsel %vm942_vm8, %v949_v48, %v951_v50  ;;  %v956_v13 = vsel %vm942_vm8, %v953_v20, %v955_v46  ;;  %v1224_v56 = vand.u32 2139095040, %v2886_v25  ;;  %v1100_v57 = vsel %vm1015_vm5, %v1099_v42, %v1075_v14 }
 0x149   : > { %vm2064_vm13 = vcmp.lt.s32.totalorder %v2063_v0, 0  ;;  %v2919_v18 = vmul.u32.u64.low %v957_v47, %v956_v13  ;;  %v2920_v34 = vmul.u32.u64.high %v957_v47, %v956_v13, %v2919_v18  ;;  %v1069_v29 = vadd.s32 %v2834_v58, %v2842_v40 }
 0x14a   : > { %v1084_v17 = vsel %vm2064_vm13, 0, %v2063_v0  ;;  %v2922_v5 = vmul.u32.u64.low %v957_v47, %v952_v12  ;;  %v2923_v23 = vmul.u32.u64.high %v957_v47, %v952_v12, %v2922_v5  ;;  %v1225_v22 = vshrl.u32 %v1224_v56, 23 }
 0x14b   : > { %v1085_v21 = vsub.s32 32, %v1084_v17  ;;  %v1089_v27 = vsub.s32 4294967266, %v1084_v17  ;;  %v948_v31 = vsel %vm942_vm8, %v945_v43, %v947_v9  ;;  %vm800_vm14 = vcmp.eq.s32.totalorder %v2878_v15, 2 }
 0x14c   : > { %v2201_v16 = vpop.eup %2200  ;;  %v1102_v14 = vsel %vm2907_vm6, 0, %v1100_v57  ;;  %v1221_v6 = vand.u32 2147483647, %v2886_v25  ;;  %v2069_v26 = vadd.s32 4294967169, %v1225_v22  ;;  %v1086_v52 = vshll.u32 %v2891_v33, %v1084_v17 }
 0x14d   : > { %v2203_v24 = vpop.eup %2202  ;;  %v801_v39 = vxor.u32 2147483648, %v2201_v16  ;;  %v1087_v54 = vshrl.u32 %v1069_v29, %v1085_v21  ;;  %v1090_v53 = vadd.s32 127, %v1089_v27  ;;  %v964_v40 = vmul.u32 %v957_v47, %v948_v31 }
 0x14e   : > { %v798_v58 = vxor.u32 2147483648, %v2203_v24  ;;  %vm966_vm0 = vc.u32 %v2920_v34, %v2922_v5  ;;  %v967_v11 = vadd.s32 1, %v2923_v23  ;;  %v1231_v30 = vadd.s32 1, %v2069_v26 }
 0x14f   : > { %v802_v7 = vsel %vm800_vm14, %v801_v39, %v2203_v24  ;;  %v1088_v19 = vor.u32 %v1087_v54, %v1086_v52  ;;  %v1091_v44 = vshll.u32 %v1090_v53, 23  ;;  %vm793_vm15 = vweird.f32 %v2625_v45 }
 0x150   : > { %vm796_vm1 = vcmp.lt.s32.totalorder %v2878_v15, 2  ;;  %v799_v33 = vsel %vm797_vm9, %v2201_v16, %v798_v58  ;;  %v968_v49 = vsel %vm966_vm0, %v967_v11, %v2923_v23  ;;  %v2944_v28 = vadd.f32 %v2799_v36, %v2881_v62 }
 0x151   : > { %v803_v32 = vsel %vm796_vm1, %v799_v33, %v802_v7  ;;  %v1092_v42 = vor.u32 4788187, %v1091_v44  ;;  %v969_v47 = vadd.s32 %v968_v49, %v964_v40  ;;  %v1106_v37 = vadd.s32 3, %v1102_v14 }
 0x152   : > { %v804_v38 = vsel %vm793_vm15, nan, %v803_v32  ;;  %v1228_v48 = vand.u32 8388607, %v1221_v6  ;;  %vm1232_vm2 = vcmp.gt.s32.totalorder %v1231_v30, 0  ;;  %v1095_v15 = vcvt.s32.f32 %v1088_v19 }
 0x153   : > { %1954 = vst.msk [vmem:[%s2571_s22 + $0x20] sm:$0xff] %vm1949_vm12, %v804_v38  ;;  %v1093_v45 = vand.u32 2147483647, %v1092_v42  ;;  %v970_v60 = vadd.s32 536870912, %v969_v47  ;;  %v1233_v41 = vsel %vm1232_vm2, %v1231_v30, 0  ;;  %vm911_vm3 = vcmp.lt.s32.totalorder %v2803_v35, 0 }
 0x154   : > { %v1235_v20 = vand.u32 31, %v1233_v41  ;;  %v2951_v43 = vand.u32 3, %v1106_v37  ;;  %v1229_v62 = vor.u32 8388608, %v1228_v48  ;;  %v1120_v46 = vand.u32 2139095040, %v2944_v28 }
 0x155   : > { %v1096_v10 = vmul.f32 %v1095_v15, %v1093_v45  ;;  %v971_v0 = vshrl.u32 %v970_v60, 30  ;;  %v1234_v13 = vshrl.u32 %v1233_v41, 5  ;;  %vm2974_vm4 = vcmp.le.f32.partialorder %v909_v51, 0.7853982 }
 0x156   : > { %v1236_v50 = vsub.s32 32, %v1235_v20  ;;  %v1238_v56 = vshll.u32 %v2257_v55, %v1235_v20  ;;  %v1241_v18 = vshll.u32 %v2258_v59, %v1235_v20  ;;  %v1244_v21 = vshll.u32 %v2259_v61, %v1235_v20 }
 0x157   : > { %v1097_v9 = vxor.u32 2147483648, %v1096_v10  ;;  %v972_v12 = vshll.u32 %v971_v0, 30  ;;  %v995_v16 = vsub.s32 4, %v971_v0  ;;  %v1247_v26 = vshll.u32 %v2260_v63, %v1235_v20 }
 0x158   : > { %v1239_v57 = vshrl.u32 %v2258_v59, %v1236_v50  ;;  %v1242_v17 = vshrl.u32 %v2259_v61, %v1236_v50  ;;  %v1245_v23 = vshrl.u32 %v2260_v63, %v1236_v50  ;;  %v1248_v27 = vshrl.u32 %v2261_v1, %v1236_v50 }
 0x159   : > { %v1098_v22 = vsel %vm1015_vm5, %v1097_v9, %v1096_v10  ;;  %v2961_v29 = vsub.s32 %v969_v47, %v972_v12  ;;  %v1250_v53 = vshll.u32 %v2261_v1, %v1235_v20  ;;  %v1251_v58 = vshrl.u32 %v2262_v8, %v1236_v50 }
 0x15a   : > { %v1101_v31 = vsel %vm2907_vm6, %v2741_v4, %v1098_v22  ;;  %v1240_v14 = vor.u32 %v1239_v57, %v1238_v56  ;;  %v1243_v39 = vor.u32 %v1242_v17, %v1241_v18  ;;  %v1246_v52 = vor.u32 %v1245_v23, %v1244_v21 }
 0x15b   : > { %2204 = vcosq.f32 %v1101_v31  ;;  %v975_v24 = vsub.s32 0, %v2961_v29  ;;  %v1249_v54 = vor.u32 %v1248_v27, %v1247_v26  ;;  %v1269_v11 = vshll.u32 %v1229_v62, 8 }
 0x15c   : > { %2206 = vsinq.f32 %v1101_v31  ;;  %v1117_v7 = vand.u32 2147483647, %v2944_v28  ;;  %v1121_v19 = vshrl.u32 %v1120_v46, 23  ;;  %v996_v44 = vsel %vm911_vm3, %v995_v16, %v971_v0 }
 0x15d   : > { %v2058_v40 = vmin.u32 %v975_v24, %v2961_v29  ;;  %v1237_v30 = vshrl.u32 %v2257_v55, %v1236_v50  ;;  %v1252_v33 = vor.u32 %v1251_v58, %v1250_v53  ;;  %vm1253_vm5 = vcmp.lt.s32.totalorder %v1234_v13, 1 }
 0x15e   : > { %vm1112_vm6 = vcmp.eq.s32.totalorder %v2951_v43, 2  ;;  %vm1254_vm7 = vcmp.lt.s32.totalorder %v1234_v13, 2  ;;  %vm1255_vm8 = vcmp.lt.s32.totalorder %v1234_v13, 3  ;;  %vm1256_vm11 = vcmp.lt.s32.totalorder %v1234_v13, 4 }
 0x15f   : > { %v977_v49 = vclz %v2058_v40  ;;  %vm1109_vm10 = vcmp.eq.s32.totalorder %v2951_v43, 0  ;;  %v1258_v51 = vsel %vm1256_vm11, %v1246_v52, 2102212464  ;;  %v1261_v32 = vsel %vm1253_vm5, %v1240_v14, %v1243_v39 }
 0x160   : > { %v1262_v42 = vsel %vm1256_vm11, %v1249_v54, 920167782  ;;  %v1265_v47 = vsel %vm1253_vm5, %v1243_v39, %v1246_v52  ;;  %vm1108_vm9 = vcmp.lt.s32.totalorder %v2951_v43, 2  ;;  %v1257_v37 = vsel %vm1253_vm5, %v1237_v30, %v1240_v14 }
 0x161   : > { %v2059_v38 = vadd.s32 4294967294, %v977_v49  ;;  %v1263_v48 = vsel %vm1255_vm8, %v1246_v52, %v1262_v42  ;;  %v1266_v45 = vsel %vm1256_vm11, %v1252_v33, 1326507024  ;;  %vm1105_vm13 = vweird.f32 %v2741_v4  ;;  %v218_v49 = vpop.permute.xlu0 %217 }
 0x162   : > { %v1259_v15 = vsel %vm1255_vm8, %v1243_v39, %v1258_v51  ;;  %v1264_v60 = vsel %vm1254_vm7, %v1261_v32, %v1263_v48  ;;  %v1267_v41 = vsel %vm1255_vm8, %v1249_v54, %v1266_v45  ;;  %v2065_v20 = vadd.s32 4294967169, %v1121_v19 }
 0x163   : > { %vm2060_vm14 = vcmp.lt.s32.totalorder %v2059_v38, 0  ;;  %v1268_v10 = vsel %vm1254_vm7, %v1265_v47, %v1267_v41  ;;  %v2989_v0 = vmul.u32.u64.low %v1269_v11, %v1264_v60  ;;  %v2990_v62 = vmul.u32.u64.high %v1269_v11, %v1264_v60, %v2989_v0 }
 0x164   : > { %v965_v50 = vadd.s32 %v2922_v5, %v2920_v34  ;;  %v980_v46 = vsel %vm2060_vm14, 0, %v2059_v38  ;;  %v2995_v9 = vmul.u32.u64.low %v1269_v11, %v1268_v10  ;;  %v2996_v12 = vmul.u32.u64.high %v1269_v11, %v1268_v10, %v2995_v9 }
 0x165   : > { %v2205_v56 = vpop.eup %2204  ;;  %v981_v57 = vsub.s32 32, %v980_v46  ;;  %v985_v18 = vsub.s32 4294967266, %v980_v46  ;;  %v1260_v17 = vsel %vm1254_vm7, %v1257_v37, %v1259_v15  ;;  %v1127_v23 = vadd.s32 1, %v2065_v20 }
 0x166   : > { %v2207_v22 = vpop.eup %2206  ;;  %v1113_v21 = vxor.u32 2147483648, %v2205_v56  ;;  %v982_v27 = vshll.u32 %v2961_v29, %v980_v46  ;;  %v998_v31 = vsel %vm2974_vm4, 0, %v996_v44  ;;  %v1124_v34 = vand.u32 8388607, %v1117_v7  ;;  %v223_v44 = vpop.permute.xlu1 %222 }
 0x167   : > { %v1110_v5 = vxor.u32 2147483648, %v2207_v22  ;;  %v983_v16 = vshrl.u32 %v965_v50, %v981_v57  ;;  %v986_v14 = vadd.s32 127, %v985_v18  ;;  %v1279_v26 = vadd.s32 1, %v2990_v62 }
 0x168   : > { %v1114_v13 = vsel %vm1112_vm6, %v1113_v21, %v2207_v22  ;;  %v1276_v24 = vmul.u32 %v1269_v11, %v1260_v17  ;;  %vm1278_vm0 = vc.u32 %v2996_v12, %v2989_v0  ;;  %vm1128_vm15 = vcmp.gt.s32.totalorder %v1127_v23, 0 }
 0x169   : > { %v1111_v29 = vsel %vm1109_vm10, %v2205_v56, %v1110_v5  ;;  %v984_v39 = vor.u32 %v983_v16, %v982_v27  ;;  %v987_v52 = vshll.u32 %v986_v14, 23  ;;  %v1280_v54 = vsel %vm1278_vm0, %v1279_v26, %v2990_v62 }
 0x16a   : > { %v1115_v53 = vsel %vm1108_vm9, %v1111_v29, %v1114_v13  ;;  %v1002_v58 = vadd.s32 3, %v998_v31  ;;  %v1281_v40 = vadd.s32 %v1280_v54, %v1276_v24  ;;  %v1129_v19 = vsel %vm1128_vm15, %v1127_v23, 0 }
 0x16b   : > { %v1116_v11 = vsel %vm1105_vm13, nan, %v1115_v53  ;;  %v988_v30 = vor.u32 4788187, %v987_v52  ;;  %v1125_v33 = vor.u32 8388608, %v1124_v34  ;;  %v1131_v32 = vand.u32 31, %v1129_v19 }
 0x16c   : > { %1957 = vst.msk [vmem:[%s2571_s22 + $0x38] sm:$0xff] %vm1949_vm12, %v1116_v11  ;;  %v1282_v51 = vadd.s32 536870912, %v1281_v40  ;;  %v991_v47 = vcvt.s32.f32 %v984_v39  ;;  %v260_v38 = vmul.f32 %v2868_v3, %v223_v44  ;;  %v3019_v43 = vand.u32 3, %v1002_v58 }
 0x16d   : > { %v989_v42 = vand.u32 2147483647, %v988_v30  ;;  %v1132_v48 = vsub.s32 32, %v1131_v32  ;;  %v3022_v45 = vmul.f32 %v2868_v3, %v218_v49  ;;  %vm1223_vm1 = vcmp.lt.s32.totalorder %v2886_v25, 0 }
 0x16e   : > { %v1283_v37 = vshrl.u32 %v1282_v51, 30  ;;  %v3025_v15 = vshrl.u32 %v1129_v19, 5  ;;  %v1134_v60 = vshll.u32 %v2257_v55, %v1131_v32  ;;  %v3028_v41 = vshll.u32 %v1125_v33, 8 }
 0x16f   : > { %v992_v4 = vmul.f32 %v991_v47, %v989_v42  ;;  %v1135_v10 = vshrl.u32 %v2258_v59, %v1132_v48  ;;  %v1137_v62 = vshll.u32 %v2258_v59, %v1131_v32  ;;  %v1140_v50 = vshll.u32 %v2259_v61, %v1131_v32 }
 0x170   : > { %v1284_v20 = vshll.u32 %v1283_v37, 30  ;;  %v1138_v9 = vshrl.u32 %v2259_v61, %v1132_v48  ;;  %v1141_v56 = vshrl.u32 %v2260_v63, %v1132_v48  ;;  %v1144_v57 = vshrl.u32 %v2261_v1, %v1132_v48 }
 0x171   : > { %v993_v46 = vxor.u32 2147483648, %v992_v4  ;;  %v1143_v17 = vshll.u32 %v2260_v63, %v1131_v32  ;;  %v1146_v23 = vshll.u32 %v2261_v1, %v1131_v32  ;;  %v1147_v22 = vshrl.u32 %v2262_v8, %v1132_v48 }
 0x172   : > { %v3036_v18 = vsub.s32 %v1281_v40, %v1284_v20  ;;  %vm3045_vm2 = vcmp.le.f32.partialorder %v1221_v6, 0.7853982  ;;  %v1136_v31 = vor.u32 %v1135_v10, %v1134_v60  ;;  %v1139_v34 = vor.u32 %v1138_v9, %v1137_v62 }
 0x173   : > { %v994_v21 = vsel %vm911_vm3, %v993_v46, %v992_v4  ;;  %v1142_v5 = vor.u32 %v1141_v56, %v1140_v50  ;;  %v1307_v26 = vsub.s32 4, %v1283_v37  ;;  %v1145_v13 = vor.u32 %v1144_v57, %v1143_v17 }
 0x174   : > { %v997_v16 = vsel %vm2974_vm4, %v2803_v35, %v994_v21  ;;  %v1287_v14 = vsub.s32 0, %v3036_v18  ;;  %v1148_v24 = vor.u32 %v1147_v22, %v1146_v23  ;;  %vm1149_vm3 = vcmp.lt.s32.totalorder %v3025_v15, 1 }
 0x175   : > { %2208 = vcosq.f32 %v997_v16  ;;  %v3055_v6 = vadd.f32 %v2799_v36, %v260_v38  ;;  %vm1150_vm5 = vcmp.lt.s32.totalorder %v3025_v15, 2  ;;  %vm1152_vm6 = vcmp.lt.s32.totalorder %v3025_v15, 4 }
 0x176   : > { %2210 = vsinq.f32 %v997_v16  ;;  %v2070_v29 = vmin.u32 %v1287_v14, %v3036_v18  ;;  %v1133_v2 = vshrl.u32 %v2257_v55, %v1132_v48  ;;  %v1154_v39 = vsel %vm1152_vm6, %v1142_v5, 2102212464 }
 0x177   : > { %v1157_v52 = vsel %vm1149_vm3, %v1136_v31, %v1139_v34  ;;  %v1158_v54 = vsel %vm1152_vm6, %v1145_v13, 920167782  ;;  %v1308_v58 = vsel %vm1223_vm1, %v1307_v26, %v1283_v37  ;;  %vm1151_vm4 = vcmp.lt.s32.totalorder %v3025_v15, 3 }
 0x178   : > { %v1289_v53 = vclz %v2070_v29  ;;  %v1161_v40 = vsel %vm1149_vm3, %v1139_v34, %v1142_v5  ;;  %v1153_v19 = vsel %vm1149_vm3, %v1133_v2, %v1136_v31  ;;  %v1159_v44 = vsel %vm1151_vm4, %v1142_v5, %v1158_v54 }
 0x179   : > { %v1162_v11 = vsel %vm1152_vm6, %v1148_v24, 1326507024  ;;  %v1432_v30 = vand.u32 2139095040, %v3055_v6  ;;  %vm1005_vm7 = vcmp.eq.s32.totalorder %v3019_v43, 0  ;;  %v1155_v49 = vsel %vm1151_vm4, %v1139_v34, %v1154_v39 }
 0x17a   : > { %v2071_v33 = vadd.s32 4294967294, %v1289_v53  ;;  %v1160_v51 = vsel %vm1150_vm5, %v1157_v52, %v1159_v44  ;;  %v1163_v32 = vsel %vm1151_vm4, %v1145_v13, %v1162_v11  ;;  %vm1004_vm8 = vcmp.lt.s32.totalorder %v3019_v43, 2 }
 0x17b   : > { %v1164_v42 = vsel %vm1150_vm5, %v1161_v40, %v1163_v32  ;;  %v3072_v47 = vmul.u32.u64.low %v3028_v41, %v1160_v51  ;;  %v3073_v38 = vmul.u32.u64.high %v3028_v41, %v1160_v51, %v3072_v47  ;;  %v1433_v37 = vshrl.u32 %v1432_v30, 23 }
 0x17c   : > { %vm2072_vm11 = vcmp.lt.s32.totalorder %v2071_v33, 0  ;;  %v1310_v48 = vsel %vm3045_vm2, 0, %v1308_v58  ;;  %v3079_v4 = vmul.u32.u64.low %v3028_v41, %v1164_v42  ;;  %v3080_v60 = vmul.u32.u64.high %v3028_v41, %v1164_v42, %v3079_v4 }
 0x17d   : > { %vm1008_vm10 = vcmp.eq.s32.totalorder %v3019_v43, 2  ;;  %v1292_v20 = vsel %vm2072_vm11, 0, %v2071_v33  ;;  %v2077_v10 = vadd.s32 4294967169, %v1433_v37  ;;  %v3085_v62 = vadd.f32 %v2799_v36, %v3022_v45 }
 0x17e   : > { %v1277_v50 = vadd.s32 %v2989_v0, %v2996_v12  ;;  %v1293_v46 = vsub.s32 32, %v1292_v20  ;;  %v1297_v9 = vsub.s32 4294967266, %v1292_v20  ;;  %v1156_v56 = vsel %vm1150_vm5, %v1153_v19, %v1155_v49 }
 0x17f   : > { %v2209_v57 = vpop.eup %2208  ;;  %v1314_v17 = vadd.s32 3, %v1310_v48  ;;  %v1175_v23 = vadd.s32 1, %v3073_v38  ;;  %v1429_v22 = vand.u32 2147483647, %v3055_v6  ;;  %v1439_v21 = vadd.s32 1, %v2077_v10 }
 0x180   : > { %v2211_v31 = vpop.eup %2210  ;;  %v1009_v34 = vxor.u32 2147483648, %v2209_v57  ;;  %v1294_v36 = vshll.u32 %v3036_v18, %v1292_v20  ;;  %v1295_v45 = vshrl.u32 %v1277_v50, %v1293_v46  ;;  %v1298_v5 = vadd.s32 127, %v1297_v9 }
 0x181   : > { %v1006_v16 = vxor.u32 2147483648, %v2211_v31  ;;  %v1172_v0 = vmul.u32 %v3028_v41, %v1156_v56  ;;  %vm1174_vm9 = vc.u32 %v3080_v60, %v3072_v47  ;;  %vm1440_vm13 = vcmp.gt.s32.totalorder %v1439_v21, 0 }
 0x182   : > { %v1010_v12 = vsel %vm1008_vm10, %v1009_v34, %v2211_v31  ;;  %v1296_v15 = vor.u32 %v1295_v45, %v1294_v36  ;;  %v1299_v14 = vshll.u32 %v1298_v5, 23  ;;  %v1176_v26 = vsel %vm1174_vm9, %v1175_v23, %v3073_v38 }
 0x183   : > { %v1007_v18 = vsel %vm1005_vm7, %v2209_v57, %v1006_v16  ;;  %v1177_v13 = vadd.s32 %v1176_v26, %v1172_v0  ;;  %v1436_v24 = vand.u32 8388607, %v1429_v22  ;;  %v1441_v41 = vsel %vm1440_vm13, %v1439_v21, 0 }
 0x184   : > { %vm1001_vm14 = vweird.f32 %v2803_v35  ;;  %v1011_v29 = vsel %vm1004_vm8, %v1007_v18, %v1010_v12  ;;  %v1300_v2 = vor.u32 4788187, %v1299_v14  ;;  %v1328_v39 = vand.u32 2139095040, %v3085_v62 }
 0x185   : > { %v1012_v52 = vsel %vm1001_vm14, nan, %v1011_v29  ;;  %v1178_v54 = vadd.s32 536870912, %v1177_v13  ;;  %v1443_v53 = vand.u32 31, %v1441_v41  ;;  %v1303_v40 = vcvt.s32.f32 %v1296_v15 }
 0x186   : > { %1956 = vst.msk [vmem:[%s2571_s22 + $0x30] sm:$0xff] %vm1949_vm12, %v1012_v52  ;;  %v1301_v58 = vand.u32 2147483647, %v1300_v2  ;;  %v3110_v19 = vand.u32 3, %v1314_v17  ;;  %v1437_v11 = vor.u32 8388608, %v1436_v24  ;;  %v1442_v35 = vshrl.u32 %v1441_v41, 5 }
 0x187   : > { %v1179_v44 = vshrl.u32 %v1178_v54, 30  ;;  %v1444_v30 = vsub.s32 32, %v1443_v53  ;;  %v1446_v43 = vshll.u32 %v2257_v55, %v1443_v53  ;;  %v1329_v49 = vshrl.u32 %v1328_v39, 23 }
 0x188   : > { %v1304_v33 = vmul.f32 %v1303_v40, %v1301_v58  ;;  %v1449_v42 = vshll.u32 %v2258_v59, %v1443_v53  ;;  %v1452_v38 = vshll.u32 %v2259_v61, %v1443_v53  ;;  %vm1119_vm0 = vcmp.lt.s32.totalorder %v2944_v28, 0 }
 0x189   : > { %v1180_v51 = vshll.u32 %v1179_v44, 30  ;;  %v1447_v32 = vshrl.u32 %v2258_v59, %v1444_v30  ;;  %v1450_v48 = vshrl.u32 %v2259_v61, %v1444_v30  ;;  %v1453_v4 = vshrl.u32 %v2260_v63, %v1444_v30 }
 0x18a   : > { %v1305_v37 = vxor.u32 2147483648, %v1304_v33  ;;  %v1456_v20 = vshrl.u32 %v2261_v1, %v1444_v30  ;;  %v1455_v50 = vshll.u32 %v2260_v63, %v1443_v53  ;;  %v1458_v46 = vshll.u32 %v2261_v1, %v1443_v53 }
 0x18b   : > { %v3120_v10 = vsub.s32 %v1177_v13, %v1180_v51  ;;  %v1459_v9 = vshrl.u32 %v2262_v8, %v1444_v30  ;;  %v1448_v57 = vor.u32 %v1447_v32, %v1446_v43  ;;  %v1451_v17 = vor.u32 %v1450_v48, %v1449_v42 }
 0x18c   : > { %v1306_v56 = vsel %vm1223_vm1, %v1305_v37, %v1304_v33  ;;  %v1454_v23 = vor.u32 %v1453_v4, %v1452_v38  ;;  %v1457_v34 = vor.u32 %v1456_v20, %v1455_v50  ;;  %vm1461_vm15 = vcmp.lt.s32.totalorder %v1442_v35, 1 }
 0x18d   : > { %v1309_v21 = vsel %vm3045_vm2, %v2886_v25, %v1306_v56  ;;  %v1183_v31 = vsub.s32 0, %v3120_v10  ;;  %v1203_v36 = vsub.s32 4, %v1179_v44  ;;  %v1460_v45 = vor.u32 %v1459_v9, %v1458_v46 }
 0x18e   : > { %2212 = vcosq.f32 %v1309_v21  ;;  %vm1464_vm3 = vcmp.lt.s32.totalorder %v1442_v35, 4  ;;  %vm3133_vm5 = vcmp.le.f32.partialorder %v1117_v7, 0.7853982  ;;  %v1445_v27 = vshrl.u32 %v2257_v55, %v1444_v30 }
 0x18f   : > { %2214 = vsinq.f32 %v1309_v21  ;;  %v2066_v16 = vmin.u32 %v1183_v31, %v3120_v10  ;;  %v1466_v0 = vsel %vm1464_vm3, %v1454_v23, 2102212464  ;;  %vm1463_vm1 = vcmp.lt.s32.totalorder %v1442_v35, 3 }
 0x190   : > { %v1469_v12 = vsel %vm1461_vm15, %v1448_v57, %v1451_v17  ;;  %v1470_v15 = vsel %vm1464_vm3, %v1457_v34, 920167782  ;;  %v1477_v14 = vshll.u32 %v1437_v11, 8  ;;  %v1465_v18 = vsel %vm1461_vm15, %v1445_v27, %v1448_v57 }
 0x191   : > { %v1185_v26 = vclz %v2066_v16  ;;  %v1467_v13 = vsel %vm1463_vm1, %v1451_v17, %v1466_v0  ;;  %v1473_v7 = vsel %vm1461_vm15, %v1451_v17, %v1454_v23  ;;  %vm1462_vm2 = vcmp.lt.s32.totalorder %v1442_v35, 2 }
 0x192   : > { %v1471_v24 = vsel %vm1463_vm1, %v1454_v23, %v1470_v15  ;;  %v1474_v41 = vsel %vm1464_vm3, %v1460_v45, 1326507024  ;;  %v2073_v29 = vadd.s32 4294967169, %v1329_v49  ;;  %v1204_v39 = vsel %vm1119_vm0, %v1203_v36, %v1179_v44  ;;  %v233_v45 = vpop.permute.xlu1 %232 }
 0x193   : > { %v2067_v2 = vadd.s32 4294967294, %v1185_v26  ;;  %v1472_v52 = vsel %vm1462_vm2, %v1469_v12, %v1471_v24  ;;  %v1475_v54 = vsel %vm1463_vm1, %v1457_v34, %v1474_v41  ;;  %v1468_v53 = vsel %vm1462_vm2, %v1465_v18, %v1467_v13 }
 0x194   : > { %v1476_v58 = vsel %vm1462_vm2, %v1473_v7, %v1475_v54  ;;  %v3147_v40 = vmul.u32.u64.low %v1477_v14, %v1472_v52  ;;  %v3148_v11 = vmul.u32.u64.high %v1477_v14, %v1472_v52, %v3147_v40  ;;  %v1335_v43 = vadd.s32 1, %v2073_v29 }
 0x195   : > { %vm2068_vm6 = vcmp.lt.s32.totalorder %v2067_v2, 0  ;;  %v3151_v30 = vmul.u32.u64.low %v1477_v14, %v1476_v58  ;;  %v3152_v33 = vmul.u32.u64.high %v1477_v14, %v1476_v58, %v3151_v30  ;;  %vm1317_vm4 = vcmp.eq.s32.totalorder %v3110_v19, 0 }
 0x196   : > { %vm1320_vm7 = vcmp.eq.s32.totalorder %v3110_v19, 2  ;;  %v1188_v35 = vsel %vm2068_vm6, 0, %v2067_v2  ;;  %v1325_v44 = vand.u32 2147483647, %v3085_v62  ;;  %v1173_v49 = vadd.s32 %v3072_v47, %v3080_v60 }
 0x197   : > { %v1189_v51 = vsub.s32 32, %v1188_v35  ;;  %v1193_v32 = vsub.s32 4294967266, %v1188_v35  ;;  %vm1336_vm8 = vcmp.gt.s32.totalorder %v1335_v43, 0  ;;  %v1206_v38 = vsel %vm3133_vm5, 0, %v1204_v39 }
 0x198   : > { %v2213_v42 = vpop.eup %2212  ;;  %v1484_v37 = vmul.u32 %v1477_v14, %v1468_v53  ;;  %v1487_v48 = vadd.s32 1, %v3148_v11  ;;  %v1337_v4 = vsel %vm1336_vm8, %v1335_v43, 0  ;;  %v1190_v46 = vshll.u32 %v3120_v10, %v1188_v35 }
 0x199   : > { %v2215_v20 = vpop.eup %2214  ;;  %v1321_v50 = vxor.u32 2147483648, %v2213_v42  ;;  %v1191_v9 = vshrl.u32 %v1173_v49, %v1189_v51  ;;  %v1194_v56 = vadd.s32 127, %v1193_v32  ;;  %vm1486_vm11 = vc.u32 %v3152_v33, %v3147_v40 }
 0x19a   : > { %v1318_v57 = vxor.u32 2147483648, %v2215_v20  ;;  %v1332_v47 = vand.u32 8388607, %v1325_v44  ;;  %v1339_v60 = vand.u32 31, %v1337_v4  ;;  %v1488_v31 = vsel %vm1486_vm11, %v1487_v48, %v3148_v11 }
 0x19b   : > { %v1322_v17 = vsel %vm1320_vm7, %v1321_v50, %v2215_v20  ;;  %v1192_v23 = vor.u32 %v1191_v9, %v1190_v46  ;;  %v1195_v21 = vshll.u32 %v1194_v56, 23  ;;  %vm1316_vm10 = vcmp.lt.s32.totalorder %v3110_v19, 2 }
 0x19c   : > { %v1319_v10 = vsel %vm1317_vm4, %v2213_v42, %v1318_v57  ;;  %v1489_v34 = vadd.s32 %v1488_v31, %v1484_v37  ;;  %v1340_v36 = vsub.s32 32, %v1339_v60  ;;  %vm1313_vm9 = vweird.f32 %v2886_v25 }
 0x19d   : > { %v1323_v16 = vsel %vm1316_vm10, %v1319_v10, %v1322_v17  ;;  %v1196_v27 = vor.u32 4788187, %v1195_v21  ;;  %v1210_v0 = vadd.s32 3, %v1206_v38  ;;  %v1333_v14 = vor.u32 8388608, %v1332_v47  ;;  %v3194_v38 = vld [vmem:[%s3569_s1 + $0x1] ss:$0 sm:$0xff] }
 0x19e   : > { %v1324_v12 = vsel %vm1313_vm9, nan, %v1323_v16  ;;  %v1490_v15 = vadd.s32 536870912, %v1489_v34  ;;  %v1343_v26 = vshrl.u32 %v2258_v59, %v1340_v36  ;;  %v1199_v13 = vcvt.s32.f32 %v1192_v23 }
 0x19f   : > { %1959 = vst.msk [vmem:[%s2571_s22 + $0x48] sm:$0xff] %vm1949_vm12, %v1324_v12  ;;  %v1197_v18 = vand.u32 2147483647, %v1196_v27  ;;  %v1346_v19 = vshrl.u32 %v2259_v61, %v1340_v36  ;;  %v262_v7 = vmul.f32 %v2868_v3, %v233_v45  ;;  %v1342_v41 = vshll.u32 %v2257_v55, %v1339_v60 }
 0x1a0   : > { %v1491_v24 = vshrl.u32 %v1490_v15, 30  ;;  %v1349_v25 = vshrl.u32 %v2260_v63, %v1340_v36  ;;  %v1352_v29 = vshrl.u32 %v2261_v1, %v1340_v36  ;;  %v1338_v39 = vshrl.u32 %v1337_v4, 5 }
 0x1a1   : > { %v1200_v2 = vmul.f32 %v1199_v13, %v1197_v18  ;;  %v1345_v52 = vshll.u32 %v2258_v59, %v1339_v60  ;;  %v1351_v54 = vshll.u32 %v2260_v63, %v1339_v60  ;;  %v1344_v58 = vor.u32 %v1343_v26, %v1342_v41 }
 0x1a2   : > { %v1492_v53 = vshll.u32 %v1491_v24, 30  ;;  %v1348_v11 = vshll.u32 %v2259_v61, %v1339_v60  ;;  %v1355_v30 = vshrl.u32 %v2262_v8, %v1340_v36  ;;  %v1354_v49 = vshll.u32 %v2261_v1, %v1339_v60 }
 0x1a3   : > { %v1201_v3 = vxor.u32 2147483648, %v1200_v2  ;;  %v1347_v43 = vor.u32 %v1346_v19, %v1345_v52  ;;  %v1353_v35 = vor.u32 %v1352_v29, %v1351_v54  ;;  %v3189_v42 = vshll.u32 %v1333_v14, 8 }
 0x1a4   : > { %v3187_v51 = vsub.s32 %v1489_v34, %v1492_v53  ;;  %v1350_v32 = vor.u32 %v1349_v25, %v1348_v11  ;;  %v3197_v37 = vadd.f32 %v3194_v38, %v262_v7  ;;  %v1341_v4 = vshrl.u32 %v2257_v55, %v1340_v36 }
 0x1a5   : > { %v1202_v48 = vsel %vm1119_vm0, %v1201_v3, %v1200_v2  ;;  %v1356_v20 = vor.u32 %v1355_v30, %v1354_v49  ;;  %vm1357_vm13 = vcmp.lt.s32.totalorder %v1338_v39, 1  ;;  %vm1358_vm14 = vcmp.lt.s32.totalorder %v1338_v39, 2 }
 0x1a6   : > { %v1205_v50 = vsel %vm3133_vm5, %v2944_v28, %v1202_v48  ;;  %v1495_v46 = vsub.s32 0, %v3187_v51  ;;  %vm1360_vm15 = vcmp.lt.s32.totalorder %v1338_v39, 4  ;;  %vm1359_vm3 = vcmp.lt.s32.totalorder %v1338_v39, 3 }
 0x1a7   : > { %2216 = vcosq.f32 %v1205_v50  ;;  %v1365_v9 = vsel %vm1357_vm13, %v1344_v58, %v1347_v43  ;;  %v1366_v56 = vsel %vm1360_vm15, %v1353_v35, 920167782  ;;  %v1362_v47 = vsel %vm1360_vm15, %v1350_v32, 2102212464 }
 0x1a8   : > { %2218 = vsinq.f32 %v1205_v50  ;;  %v2078_v57 = vmin.u32 %v1495_v46, %v3187_v51  ;;  %v1367_v60 = vsel %vm1359_vm3, %v1350_v32, %v1366_v56  ;;  %v1515_v17 = vsub.s32 4, %v1491_v24 }
 0x1a9   : > { %v1368_v23 = vsel %vm1358_vm14, %v1365_v9, %v1367_v60  ;;  %v1369_v5 = vsel %vm1357_vm13, %v1347_v43, %v1350_v32  ;;  %v1370_v21 = vsel %vm1360_vm15, %v1356_v20, 1326507024  ;;  %v1211_v31 = vand.u32 3, %v1210_v0 }
 0x1aa   : > { %v1497_v10 = vclz %v2078_v57  ;;  %v1361_v34 = vsel %vm1357_vm13, %v1341_v4, %v1344_v58  ;;  %v1363_v36 = vsel %vm1359_vm3, %v1347_v43, %v1362_v47  ;;  %v1371_v45 = vsel %vm1359_vm3, %v1353_v35, %v1370_v21 }
 0x1ab   : > { %v3212_v16 = vmul.u32.u64.low %v3189_v42, %v1368_v23  ;;  %v3213_v27 = vmul.u32.u64.high %v3189_v42, %v1368_v23, %v3212_v16  ;;  %vm1431_vm0 = vcmp.lt.s32.totalorder %v3055_v6, 0  ;;  %v1372_v15 = vsel %vm1358_vm14, %v1369_v5, %v1371_v45  ;;  %v3250_v23 = vld [vmem:[%s3569_s1] ss:$0 sm:$0xff] }
 0x1ac   : > { %v2079_v12 = vadd.s32 4294967294, %v1497_v10  ;;  %v1640_v14 = vand.u32 2139095040, %v3197_v37  ;;  %v1516_v26 = vsel %vm1431_vm0, %v1515_v17, %v1491_v24  ;;  %vm1209_vm5 = vweird.f32 %v2944_v28 }
 0x1ad   : > { %v3221_v0 = vmul.u32.u64.low %v3189_v42, %v1372_v15  ;;  %v3222_v18 = vmul.u32.u64.high %v3189_v42, %v1372_v15, %v3221_v0  ;;  %vm3227_vm1 = vcmp.le.f32.partialorder %v1429_v22, 0.7853982  ;;  %v1364_v19 = vsel %vm1358_vm14, %v1361_v34, %v1363_v36 }
 0x1ae   : > { %vm2080_vm2 = vcmp.lt.s32.totalorder %v2079_v12, 0  ;;  %v1641_v7 = vshrl.u32 %v1640_v14, 23  ;;  %vm1212_vm6 = vcmp.lt.s32.totalorder %v1211_v31, 2  ;;  %v1485_v24 = vadd.s32 %v3147_v40, %v3152_v33 }
 0x1af   : > { %v1500_v41 = vsel %vm2080_vm2, 0, %v2079_v12  ;;  %v1383_v25 = vadd.s32 1, %v3213_v27  ;;  %v1518_v52 = vsel %vm3227_vm1, 0, %v1516_v26  ;;  %v1380_v39 = vmul.u32 %v3189_v42, %v1364_v19  ;;  %v228_v42 = vpop.permute.xlu0 %227 }
 0x1b0   : > { %v1501_v29 = vsub.s32 32, %v1500_v41  ;;  %v1505_v2 = vsub.s32 4294967266, %v1500_v41  ;;  %v2085_v22 = vadd.s32 4294967169, %v1641_v7  ;;  %v1502_v53 = vshll.u32 %v3187_v51, %v1500_v41 }
 0x1b1   : > { %v2217_v54 = vpop.eup %2216  ;;  %vm1382_vm4 = vc.u32 %v3222_v18, %v3212_v16  ;;  %v1637_v58 = vand.u32 2147483647, %v3197_v37  ;;  %vm1216_vm7 = vcmp.eq.s32.totalorder %v1211_v31, 2  ;;  %vm1213_vm8 = vcmp.eq.s32.totalorder %v1211_v31, 0 }
 0x1b2   : > { %v2219_v11 = vpop.eup %2218  ;;  %v1217_v40 = vxor.u32 2147483648, %v2217_v54  ;;  %v1503_v33 = vshrl.u32 %v1485_v24, %v1501_v29  ;;  %v1506_v30 = vadd.s32 127, %v1505_v2  ;;  %v1384_v3 = vsel %vm1382_vm4, %v1383_v25, %v3213_v27 }
 0x1b3   : > { %v1214_v43 = vxor.u32 2147483648, %v2219_v11  ;;  %v1385_v35 = vadd.s32 %v1384_v3, %v1380_v39  ;;  %v1647_v49 = vadd.s32 1, %v2085_v22  ;;  %v1522_v20 = vadd.s32 3, %v1518_v52 }
 0x1b4   : > { %v1218_v32 = vsel %vm1216_vm7, %v1217_v40, %v2219_v11  ;;  %v1504_v48 = vor.u32 %v1503_v33, %v1502_v53  ;;  %v1507_v51 = vshll.u32 %v1506_v30, 23  ;;  %v1644_v56 = vand.u32 8388607, %v1637_v58 }
 0x1b5   : > { %v1215_v4 = vsel %vm1213_vm8, %v2217_v54, %v1214_v43  ;;  %v1386_v50 = vadd.s32 536870912, %v1385_v35  ;;  %vm1648_vm11 = vcmp.gt.s32.totalorder %v1647_v49, 0  ;;  %v261_v5 = vmul.f32 %v3250_v23, %v228_v42 }
 0x1b6   : > { %v1219_v46 = vsel %vm1212_vm6, %v1215_v4, %v1218_v32  ;;  %v1508_v9 = vor.u32 4788187, %v1507_v51  ;;  %v1649_v57 = vsel %vm1648_vm11, %v1647_v49, 0  ;;  %v1511_v31 = vcvt.s32.f32 %v1504_v48 }
 0x1b7   : > { %v1220_v47 = vsel %vm1209_vm5, nan, %v1219_v46  ;;  %v1387_v60 = vshrl.u32 %v1386_v50, 30  ;;  %v1651_v17 = vand.u32 31, %v1649_v57  ;;  %vm1327_vm10 = vcmp.lt.s32.totalorder %v3085_v62, 0 }
 0x1b8   : > { %1958 = vst.msk [vmem:[%s2571_s22 + $0x40] sm:$0xff] %vm1949_vm12, %v1220_v47  ;;  %v1509_v21 = vand.u32 2147483647, %v1508_v9  ;;  %v3256_v28 = vand.u32 3, %v1522_v20  ;;  %v1381_v45 = vadd.s32 %v3212_v16, %v3222_v18  ;;  %v1645_v27 = vor.u32 8388608, %v1644_v56 }
 0x1b9   : > { %v1388_v10 = vshll.u32 %v1387_v60, 30  ;;  %v1652_v34 = vsub.s32 32, %v1651_v17  ;;  %v3261_v15 = vshrl.u32 %v1649_v57, 5  ;;  %v3265_v26 = vadd.f32 %v3194_v38, %v261_v5 }
 0x1ba   : > { %v1512_v36 = vmul.f32 %v1511_v31, %v1509_v21  ;;  %v1654_v19 = vshll.u32 %v2257_v55, %v1651_v17  ;;  %v1657_v16 = vshll.u32 %v2258_v59, %v1651_v17  ;;  %v1660_v18 = vshll.u32 %v2259_v61, %v1651_v17 }
 0x1bb   : > { %v3259_v12 = vsub.s32 %v1385_v35, %v1388_v10  ;;  %v1655_v14 = vshrl.u32 %v2258_v59, %v1652_v34  ;;  %v1658_v7 = vshrl.u32 %v2259_v61, %v1652_v34  ;;  %v1661_v24 = vshrl.u32 %v2260_v63, %v1652_v34 }
 0x1bc   : > { %v1513_v0 = vxor.u32 2147483648, %v1512_v36  ;;  %v1664_v25 = vshrl.u32 %v2261_v1, %v1652_v34  ;;  %v1411_v2 = vsub.s32 4, %v1387_v60  ;;  %v1663_v22 = vshll.u32 %v2260_v63, %v1651_v17 }
 0x1bd   : > { %v1391_v41 = vsub.s32 0, %v3259_v12  ;;  %v1656_v52 = vor.u32 %v1655_v14, %v1654_v19  ;;  %v1659_v39 = vor.u32 %v1658_v7, %v1657_v16  ;;  %v1662_v11 = vor.u32 %v1661_v24, %v1660_v18 }
 0x1be   : > { %v1514_v29 = vsel %vm1431_vm0, %v1513_v0, %v1512_v36  ;;  %v1665_v40 = vor.u32 %v1664_v25, %v1663_v22  ;;  %v1666_v33 = vshll.u32 %v2261_v1, %v1651_v17  ;;  %v1667_v30 = vshrl.u32 %v2262_v8, %v1652_v34 }
 0x1bf   : > { %v1517_v54 = vsel %vm3227_vm1, %v3055_v6, %v1514_v29  ;;  %v2074_v53 = vmin.u32 %v1391_v41, %v3259_v12  ;;  %vm3285_vm9 = vcmp.le.f32.partialorder %v1325_v44, 0.7853982  ;;  %v3289_v13 = vshll.u32 %v1645_v27, 8 }
 0x1c0   : > { %2220 = vcosq.f32 %v1517_v54  ;;  %v1536_v35 = vand.u32 2139095040, %v3265_v26  ;;  %v1412_v49 = vsel %vm1327_vm10, %v1411_v2, %v1387_v60  ;;  %v1653_v32 = vshrl.u32 %v2257_v55, %v1652_v34 }
 0x1c1   : > { %2222 = vsinq.f32 %v1517_v54  ;;  %v1393_v43 = vclz %v2074_v53  ;;  %v1668_v48 = vor.u32 %v1667_v30, %v1666_v33  ;;  %vm1669_vm13 = vcmp.lt.s32.totalorder %v3261_v15, 1  ;;  %v243_v30 = vpop.permute.xlu1 %242 }
 0x1c2   : > { %vm1671_vm14 = vcmp.lt.s32.totalorder %v3261_v15, 3  ;;  %vm1672_vm15 = vcmp.lt.s32.totalorder %v3261_v15, 4  ;;  %v1677_v44 = vsel %vm1669_vm13, %v1656_v52, %v1659_v39  ;;  %v1681_v20 = vsel %vm1669_vm13, %v1659_v39, %v1662_v11 }
 0x1c3   : > { %v2075_v51 = vadd.s32 4294967294, %v1393_v43  ;;  %v1674_v42 = vsel %vm1672_vm15, %v1662_v11, 2102212464  ;;  %v1678_v4 = vsel %vm1672_vm15, %v1665_v40, 920167782  ;;  %vm1670_vm0 = vcmp.lt.s32.totalorder %v3261_v15, 2 }
 0x1c4   : > { %v1682_v50 = vsel %vm1672_vm15, %v1668_v48, 1326507024  ;;  %v1679_v46 = vsel %vm1671_vm14, %v1662_v11, %v1678_v4  ;;  %vm1524_vm5 = vcmp.lt.s32.totalorder %v3256_v28, 2  ;;  %v1673_v57 = vsel %vm1669_vm13, %v1653_v32, %v1656_v52 }
 0x1c5   : > { %vm2076_vm3 = vcmp.lt.s32.totalorder %v2075_v51, 0  ;;  %v1683_v9 = vsel %vm1671_vm14, %v1665_v40, %v1682_v50  ;;  %v1680_v47 = vsel %vm1670_vm0, %v1677_v44, %v1679_v46  ;;  %vm1521_vm1 = vweird.f32 %v3055_v6 }
 0x1c6   : > { %v1396_v56 = vsel %vm2076_vm3, 0, %v2075_v51  ;;  %v1684_v60 = vsel %vm1670_vm0, %v1681_v20, %v1683_v9  ;;  %v1675_v21 = vsel %vm1671_vm14, %v1659_v39, %v1674_v42  ;;  %v1537_v31 = vshrl.u32 %v1536_v35, 23 }
 0x1c7   : > { %v1397_v17 = vsub.s32 32, %v1396_v56  ;;  %v1401_v5 = vsub.s32 4294967266, %v1396_v56  ;;  %v3312_v10 = vmul.u32.u64.low %v3289_v13, %v1684_v60  ;;  %v3313_v34 = vmul.u32.u64.high %v3289_v13, %v1684_v60, %v3312_v10 }
 0x1c8   : > { %v3316_v36 = vmul.u32.u64.low %v3289_v13, %v1680_v47  ;;  %v3317_v27 = vmul.u32.u64.high %v3289_v13, %v1680_v47, %v3316_v36  ;;  %v1398_v14 = vshll.u32 %v3259_v12, %v1396_v56  ;;  %v2081_v7 = vadd.s32 4294967169, %v1537_v31 }
 0x1c9   : > { %v1399_v0 = vshrl.u32 %v1381_v45, %v1397_v17  ;;  %v1402_v19 = vadd.s32 127, %v1401_v5  ;;  %vm1525_vm2 = vcmp.eq.s32.totalorder %v3256_v28, 0  ;;  %vm1528_vm6 = vcmp.eq.s32.totalorder %v3256_v28, 2 }
 0x1ca   : > { %v2221_v24 = vpop.eup %2220  ;;  %v1414_v41 = vsel %vm3285_vm9, 0, %v1412_v49  ;;  %v1676_v16 = vsel %vm1670_vm0, %v1673_v57, %v1675_v21  ;;  %v1543_v52 = vadd.s32 1, %v2081_v7  ;;  %vm1694_vm4 = vc.u32 %v3313_v34, %v3316_v36 }
 0x1cb   : > { %v2223_v18 = vpop.eup %2222  ;;  %v1529_v25 = vxor.u32 2147483648, %v2221_v24  ;;  %v1400_v29 = vor.u32 %v1399_v0, %v1398_v14  ;;  %v1403_v2 = vshll.u32 %v1402_v19, 23  ;;  %v1695_v45 = vadd.s32 1, %v3317_v27 }
 0x1cc   : > { %v1526_v12 = vxor.u32 2147483648, %v2223_v18  ;;  %v1533_v22 = vand.u32 2147483647, %v3265_v26  ;;  %v1692_v39 = vmul.u32 %v3289_v13, %v1676_v16  ;;  %vm1544_vm7 = vcmp.gt.s32.totalorder %v1543_v52, 0 }
 0x1cd   : > { %v1530_v54 = vsel %vm1528_vm6, %v1529_v25, %v2223_v18  ;;  %v1404_v53 = vor.u32 4788187, %v1403_v2  ;;  %v1418_v11 = vadd.s32 3, %v1414_v41  ;;  %v1696_v40 = vsel %vm1694_vm4, %v1695_v45, %v3317_v27 }
 0x1ce   : > { %v1527_v15 = vsel %vm1525_vm2, %v2221_v24, %v1526_v12  ;;  %v1545_v33 = vsel %vm1544_vm7, %v1543_v52, 0  ;;  %v1407_v49 = vcvt.s32.f32 %v1400_v29  ;;  %v1697_v32 = vadd.s32 %v1696_v40, %v1692_v39 }
 0x1cf   : > { %v1531_v43 = vsel %vm1524_vm5, %v1527_v15, %v1530_v54  ;;  %v1405_v35 = vand.u32 2147483647, %v1404_v53  ;;  %v1547_v51 = vand.u32 31, %v1545_v33  ;;  %v264_v42 = vmul.f32 %v3250_v23, %v243_v30 }
 0x1d0   : > { %v1532_v48 = vsel %vm1521_vm1, nan, %v1531_v43  ;;  %v1698_v44 = vadd.s32 536870912, %v1697_v32  ;;  %v3342_v4 = vand.u32 3, %v1418_v11  ;;  %v1540_v20 = vand.u32 8388607, %v1533_v22 }
 0x1d1   : > { %1961 = vst.msk [vmem:[%s2571_s22 + $0x58] sm:$0xff] %vm1949_vm12, %v1532_v48  ;;  %v1408_v13 = vmul.f32 %v1407_v49, %v1405_v35  ;;  %v1546_v28 = vshrl.u32 %v1545_v33, 5  ;;  %v1548_v50 = vsub.s32 32, %v1547_v51  ;;  %v1550_v6 = vshll.u32 %v2257_v55, %v1547_v51  ;;  %v238_v49 = vpop.permute.xlu0 %237 }
 0x1d2   : > { %v3346_v9 = vshrl.u32 %v1698_v44, 30  ;;  %v1553_v56 = vshll.u32 %v2258_v59, %v1547_v51  ;;  %v1556_v60 = vshll.u32 %v2259_v61, %v1547_v51  ;;  %v1559_v31 = vshll.u32 %v2260_v63, %v1547_v51 }
 0x1d3   : > { %v1409_v46 = vxor.u32 2147483648, %v1408_v13  ;;  %v1551_v57 = vshrl.u32 %v2258_v59, %v1548_v50  ;;  %v1554_v47 = vshrl.u32 %v2259_v61, %v1548_v50  ;;  %v1557_v17 = vshrl.u32 %v2260_v63, %v1548_v50 }
 0x1d4   : > { %v1700_v21 = vshll.u32 %v3346_v9, 30  ;;  %v1560_v10 = vshrl.u32 %v2261_v1, %v1548_v50  ;;  %v1541_v24 = vor.u32 8388608, %v1540_v20  ;;  %v1562_v16 = vshll.u32 %v2261_v1, %v1547_v51 }
 0x1d5   : > { %v1410_v5 = vsel %vm1327_vm10, %v1409_v46, %v1408_v13  ;;  %v1552_v14 = vor.u32 %v1551_v57, %v1550_v6  ;;  %v1555_v0 = vor.u32 %v1554_v47, %v1553_v56  ;;  %v1558_v19 = vor.u32 %v1557_v17, %v1556_v60 }
 0x1d6   : > { %v1413_v27 = vsel %vm3285_vm9, %v3085_v62, %v1410_v5  ;;  %v3362_v7 = vsub.s32 %v1697_v32, %v1700_v21  ;;  %v1561_v41 = vor.u32 %v1560_v10, %v1559_v31  ;;  %v1563_v18 = vshrl.u32 %v2262_v8, %v1548_v50 }
 0x1d7   : > { %2224 = vcosq.f32 %v1413_v27  ;;  %v3367_v25 = vadd.f32 %v3194_v38, %v264_v42  ;;  %vm1639_vm8 = vcmp.lt.s32.totalorder %v3197_v37, 0  ;;  %vm1565_vm11 = vcmp.lt.s32.totalorder %v1546_v28, 1 }
 0x1d8   : > { %2226 = vsinq.f32 %v1413_v27  ;;  %v1703_v3 = vsub.s32 0, %v3362_v7  ;;  %vm1567_vm10 = vcmp.lt.s32.totalorder %v1546_v28, 3  ;;  %vm1568_vm9 = vcmp.lt.s32.totalorder %v1546_v28, 4 }
 0x1d9   : > { %v1564_v29 = vor.u32 %v1563_v18, %v1562_v16  ;;  %v1570_v2 = vsel %vm1568_vm9, %v1558_v19, 2102212464  ;;  %v1573_v52 = vsel %vm1565_vm11, %v1552_v14, %v1555_v0  ;;  %v1574_v12 = vsel %vm1568_vm9, %v1561_v41, 920167782 }
 0x1da   : > { %v2086_v45 = vmin.u32 %v1703_v3, %v3362_v7  ;;  %v1549_v54 = vshrl.u32 %v2257_v55, %v1548_v50  ;;  %vm1566_vm13 = vcmp.lt.s32.totalorder %v1546_v28, 2  ;;  %v1575_v53 = vsel %vm1567_vm10, %v1558_v19, %v1574_v12 }
 0x1db   : > { %v1576_v39 = vsel %vm1566_vm13, %v1573_v52, %v1575_v53  ;;  %v1577_v15 = vsel %vm1565_vm11, %v1555_v0, %v1558_v19  ;;  %v1578_v11 = vsel %vm1568_vm9, %v1564_v29, 1326507024  ;;  %v1581_v40 = vshll.u32 %v1541_v24, 8 }
 0x1dc   : > { %vm1420_vm14 = vcmp.lt.s32.totalorder %v3342_v4, 2  ;;  %vm1421_vm15 = vcmp.eq.s32.totalorder %v3342_v4, 0  ;;  %vm3381_vm3 = vcmp.le.f32.partialorder %v1637_v58, 0.7853982  ;;  %v1705_v30 = vclz %v2086_v45 }
 0x1dd   : > { %v1569_v43 = vsel %vm1565_vm11, %v1549_v54, %v1552_v14  ;;  %v1571_v35 = vsel %vm1567_vm10, %v1555_v0, %v1570_v2  ;;  %vm1417_vm0 = vweird.f32 %v3085_v62  ;;  %v1723_v32 = vsub.s32 4, %v3346_v9 }
 0x1de   : > { %v1579_v48 = vsel %vm1567_vm10, %v1561_v41, %v1578_v11  ;;  %v3390_v51 = vmul.u32.u64.low %v1581_v40, %v1576_v39  ;;  %v3391_v13 = vmul.u32.u64.high %v1581_v40, %v1576_v39, %v3390_v51  ;;  %vm1424_vm5 = vcmp.eq.s32.totalorder %v3342_v4, 2 }
 0x1df   : > { %v2087_v58 = vadd.s32 4294967294, %v1705_v30  ;;  %v1580_v44 = vsel %vm1566_vm13, %v1577_v15, %v1579_v48  ;;  %v1848_v42 = vand.u32 2139095040, %v3367_v25  ;;  %v1572_v20 = vsel %vm1566_vm13, %v1569_v43, %v1571_v35 }
 0x1e0   : > { %v3398_v50 = vmul.u32.u64.low %v1581_v40, %v1580_v44  ;;  %v3399_v46 = vmul.u32.u64.high %v1581_v40, %v1580_v44, %v3398_v50  ;;  %v263_v6 = vmul.f32 %v3250_v23, %v238_v49  ;;  %v1693_v57 = vadd.s32 %v3316_v36, %v3313_v34 }
 0x1e1   : > { %v2225_v56 = vpop.eup %2224  ;;  %vm2088_vm1 = vcmp.lt.s32.totalorder %v2087_v58, 0  ;;  %v1845_v47 = vand.u32 2147483647, %v3367_v25  ;;  %v1849_v60 = vshrl.u32 %v1848_v42, 23  ;;  %v1724_v28 = vsel %vm1639_vm8, %v1723_v32, %v3346_v9 }
 0x1e2   : > { %v2227_v17 = vpop.eup %2226  ;;  %v1425_v5 = vxor.u32 2147483648, %v2225_v56  ;;  %v1708_v21 = vsel %vm2088_vm1, 0, %v2087_v58  ;;  %v1591_v31 = vadd.s32 1, %v3391_v13  ;;  %v1588_v14 = vmul.u32 %v1581_v40, %v1572_v20 }
 0x1e3   : > { %v1422_v10 = vxor.u32 2147483648, %v2227_v17  ;;  %v1709_v27 = vsub.s32 32, %v1708_v21  ;;  %v1713_v23 = vsub.s32 4294967266, %v1708_v21  ;;  %v1710_v36 = vshll.u32 %v3362_v7, %v1708_v21 }
 0x1e4   : > { %v1426_v34 = vsel %vm1424_vm5, %v1425_v5, %v2227_v17  ;;  %vm1590_vm2 = vc.u32 %v3399_v46, %v3390_v51  ;;  %v2093_v0 = vadd.s32 4294967169, %v1849_v60  ;;  %v1726_v18 = vsel %vm3381_vm3, 0, %v1724_v28 }
 0x1e5   : > { %v1423_v19 = vsel %vm1421_vm15, %v2225_v56, %v1422_v10  ;;  %v1711_v9 = vshrl.u32 %v1693_v57, %v1709_v27  ;;  %v1714_v24 = vadd.s32 127, %v1713_v23  ;;  %v1592_v41 = vsel %vm1590_vm2, %v1591_v31, %v3391_v13 }
 0x1e6   : > { %v1427_v16 = vsel %vm1420_vm14, %v1423_v19, %v1426_v34  ;;  %v1593_v3 = vadd.s32 %v1592_v41, %v1588_v14  ;;  %v1855_v29 = vadd.s32 1, %v2093_v0  ;;  %v1730_v54 = vadd.s32 3, %v1726_v18 }
 0x1e7   : > { %v1428_v7 = vsel %vm1417_vm0, nan, %v1427_v16  ;;  %v1712_v2 = vor.u32 %v1711_v9, %v1710_v36  ;;  %v1715_v52 = vshll.u32 %v1714_v24, 23  ;;  %v1852_v4 = vand.u32 8388607, %v1845_v47 }
 0x1e8   : > { %1960 = vst.msk [vmem:[%s2571_s22 + $0x50] sm:$0xff] %vm1949_vm12, %v1428_v7  ;;  %v1594_v12 = vadd.s32 536870912, %v1593_v3  ;;  %vm1856_vm6 = vcmp.gt.s32.totalorder %v1855_v29, 0  ;;  %v3430_v11 = vadd.f32 %v3194_v38, %v263_v6  ;;  %v3433_v49 = vand.u32 3, %v1730_v54 }
 0x1e9   : > { %v1716_v45 = vor.u32 4788187, %v1715_v52  ;;  %v1857_v53 = vsel %vm1856_vm6, %v1855_v29, 0  ;;  %v1719_v40 = vcvt.s32.f32 %v1712_v2  ;;  %v1853_v48 = vor.u32 8388608, %v1852_v4 }
 0x1ea   : > { %v3425_v39 = vshrl.u32 %v1594_v12, 30  ;;  %v1859_v15 = vand.u32 31, %v1857_v53  ;;  %v1744_v58 = vand.u32 2139095040, %v3430_v11  ;;  %v1858_v17 = vshrl.u32 %v1857_v53, 5 }
 0x1eb   : > { %v1717_v62 = vand.u32 2147483647, %v1716_v45  ;;  %v1589_v36 = vadd.s32 %v3390_v51, %v3399_v46  ;;  %v1893_v19 = vshll.u32 %v1853_v48, 8  ;;  %vm1535_vm11 = vcmp.lt.s32.totalorder %v3265_v26, 0 }
 0x1ec   : > { %v1596_v30 = vshll.u32 %v3425_v39, 30  ;;  %v1860_v43 = vsub.s32 32, %v1859_v15  ;;  %v1862_v42 = vshll.u32 %v2257_v55, %v1859_v15  ;;  %v1865_v6 = vshll.u32 %v2258_v59, %v1859_v15 }
 0x1ed   : > { %v1720_v35 = vmul.f32 %v1719_v40, %v1717_v62  ;;  %v1868_v56 = vshll.u32 %v2259_v61, %v1859_v15  ;;  %v1871_v21 = vshll.u32 %v2260_v63, %v1859_v15  ;;  %v1874_v14 = vshll.u32 %v2261_v1, %v1859_v15 }
 0x1ee   : > { %v3435_v32 = vsub.s32 %v1593_v3, %v1596_v30  ;;  %v1863_v13 = vshrl.u32 %v2258_v59, %v1860_v43  ;;  %v1866_v38 = vshrl.u32 %v2259_v61, %v1860_v43  ;;  %v1869_v20 = vshrl.u32 %v2260_v63, %v1860_v43 }
 0x1ef   : > { %v1721_v44 = vxor.u32 2147483648, %v1720_v35  ;;  %v1872_v57 = vshrl.u32 %v2261_v1, %v1860_v43  ;;  %v1875_v34 = vshrl.u32 %v2262_v8, %v1860_v43  ;;  %v1861_v9 = vshrl.u32 %v2257_v55, %v1860_v43 }
 0x1f0   : > { %v1599_v50 = vsub.s32 0, %v3435_v32  ;;  %v1864_v5 = vor.u32 %v1863_v13, %v1862_v42  ;;  %v1867_v10 = vor.u32 %v1866_v38, %v1865_v6  ;;  %v1870_v27 = vor.u32 %v1869_v20, %v1868_v56 }
 0x1f1   : > { %v1722_v60 = vsel %vm1639_vm8, %v1721_v44, %v1720_v35  ;;  %v1873_v23 = vor.u32 %v1872_v57, %v1871_v21  ;;  %v1876_v33 = vor.u32 %v1875_v34, %v1874_v14  ;;  %vm1877_vm4 = vcmp.lt.s32.totalorder %v1858_v17, 1 }
 0x1f2   : > { %v1725_v28 = vsel %vm3381_vm3, %v3197_v37, %v1722_v60  ;;  %v2082_v31 = vmin.u32 %v1599_v50, %v3435_v32  ;;  %v1745_v24 = vshrl.u32 %v1744_v58, 23  ;;  %vm1879_vm7 = vcmp.lt.s32.totalorder %v1858_v17, 3 }
 0x1f3   : > { %2228 = vcosq.f32 %v1725_v28  ;;  %vm1880_vm8 = vcmp.lt.s32.totalorder %v1858_v17, 4  ;;  %v1885_v16 = vsel %vm1877_vm4, %v1864_v5, %v1867_v10  ;;  %v1889_v29 = vsel %vm1877_vm4, %v1867_v10, %v1870_v27 }
 0x1f4   : > { %2230 = vsinq.f32 %v1725_v28  ;;  %v1601_v0 = vclz %v2082_v31  ;;  %v1882_v18 = vsel %vm1880_vm8, %v1870_v27, 2102212464  ;;  %v1886_v3 = vsel %vm1880_vm8, %v1873_v23, 920167782 }
 0x1f5   : > { %v1890_v7 = vsel %vm1880_vm8, %v1876_v33, 1326507024  ;;  %vm1878_vm9 = vcmp.lt.s32.totalorder %v1858_v17, 2  ;;  %v1887_v51 = vsel %vm1879_vm7, %v1870_v27, %v1886_v3  ;;  %vm1732_vm13 = vcmp.lt.s32.totalorder %v3433_v49, 2 }
 0x1f6   : > { %v2083_v41 = vadd.s32 4294967294, %v1601_v0  ;;  %v1891_v46 = vsel %vm1879_vm7, %v1873_v23, %v1890_v7  ;;  %v1881_v52 = vsel %vm1877_vm4, %v1861_v9, %v1864_v5  ;;  %v1888_v12 = vsel %vm1878_vm9, %v1885_v16, %v1887_v51 }
 0x1f7   : > { %v1892_v45 = vsel %vm1878_vm9, %v1889_v29, %v1891_v46  ;;  %vm1729_vm14 = vweird.f32 %v3197_v37  ;;  %v1883_v4 = vsel %vm1879_vm7, %v1867_v10, %v1882_v18  ;;  %v2089_v15 = vadd.s32 4294967169, %v1745_v24 }
 0x1f8   : > { %vm2084_vm10 = vcmp.lt.s32.totalorder %v2083_v41, 0  ;;  %v3469_v62 = vmul.u32.u64.low %v1893_v19, %v1892_v45  ;;  %v3470_v40 = vmul.u32.u64.high %v1893_v19, %v1892_v45, %v3469_v62  ;;  %vm1733_vm15 = vcmp.eq.s32.totalorder %v3433_v49, 0 }
 0x1f9   : > { %v1604_v2 = vsel %vm2084_vm10, 0, %v2083_v41  ;;  %v3472_v30 = vmul.u32.u64.low %v1893_v19, %v1888_v12  ;;  %v3473_v43 = vmul.u32.u64.high %v1893_v19, %v1888_v12, %v3472_v30  ;;  %v1751_v58 = vadd.s32 1, %v2089_v15 }
 0x1fa   : > { %v1605_v54 = vsub.s32 32, %v1604_v2  ;;  %v1609_v53 = vsub.s32 4294967266, %v1604_v2  ;;  %v1606_v35 = vshll.u32 %v3435_v32, %v1604_v2  ;;  %vm1736_vm3 = vcmp.eq.s32.totalorder %v3433_v49, 2 }
 0x1fb   : > { %v1619_v42 = vsub.s32 4, %v3425_v39  ;;  %v1884_v38 = vsel %vm1878_vm9, %v1881_v52, %v1883_v4  ;;  %vm1752_vm0 = vcmp.gt.s32.totalorder %v1751_v58, 0  ;;  %vm1902_vm5 = vc.u32 %v3470_v40, %v3472_v30 }
 0x1fc   : > { %v1607_v48 = vshrl.u32 %v1589_v36, %v1605_v54  ;;  %v1610_v13 = vadd.s32 127, %v1609_v53  ;;  %v1903_v32 = vadd.s32 1, %v3473_v43  ;;  %v1741_v60 = vand.u32 2147483647, %v3430_v11 }
 0x1fd   : > { %v2229_v44 = vpop.eup %2228  ;;  %v1900_v28 = vmul.u32 %v1893_v19, %v1884_v38  ;;  %v1753_v31 = vsel %vm1752_vm0, %v1751_v58, 0  ;;  %v1620_v10 = vsel %vm1535_vm11, %v1619_v42, %v3425_v39  ;;  %vm3497_vm1 = vcmp.le.f32.partialorder %v1533_v22, 0.7853982 }
 0x1fe   : > { %v2231_v20 = vpop.eup %2230  ;;  %v1737_v50 = vxor.u32 2147483648, %v2229_v44  ;;  %v1608_v6 = vor.u32 %v1607_v48, %v1606_v35  ;;  %v1611_v56 = vshll.u32 %v1610_v13, 23  ;;  %v1904_v27 = vsel %vm1902_vm5, %v1903_v32, %v3473_v43 }
 0x1ff   : > { %v1734_v57 = vxor.u32 2147483648, %v2231_v20  ;;  %v1755_v23 = vand.u32 31, %v1753_v31  ;;  %v1905_v0 = vadd.s32 %v1904_v27, %v1900_v28  ;;  %v1748_v39 = vand.u32 8388607, %v1741_v60 }
 0x200   : > { %v1738_v5 = vsel %vm1736_vm3, %v1737_v50, %v2231_v20  ;;  %v1612_v21 = vor.u32 4788187, %v1611_v56  ;;  %v1615_v36 = vcvt.s32.f32 %v1608_v6  ;;  %v1622_v24 = vsel %vm3497_vm1, 0, %v1620_v10 }
 0x201   : > { %v1735_v17 = vsel %vm1733_vm15, %v2229_v44, %v1734_v57  ;;  %v1756_v33 = vsub.s32 32, %v1755_v23  ;;  %v1906_v41 = vadd.s32 536870912, %v1905_v0  ;;  %v1754_v16 = vshrl.u32 %v1753_v31, 5 }
 0x202   : > { %v1739_v14 = vsel %vm1732_vm13, %v1735_v17, %v1738_v5  ;;  %v1613_v34 = vand.u32 2147483647, %v1612_v21  ;;  %v1758_v37 = vshll.u32 %v2257_v55, %v1755_v23  ;;  %v1761_v22 = vshll.u32 %v2258_v59, %v1755_v23 }
 0x203   : > { %v1740_v19 = vsel %vm1729_vm14, nan, %v1739_v14  ;;  %v1759_v18 = vshrl.u32 %v2258_v59, %v1756_v33  ;;  %v1762_v3 = vshrl.u32 %v2259_v61, %v1756_v33  ;;  %v3511_v7 = vshrl.u32 %v1906_v41, 30 }
 0x204   : > { %1963 = vst.msk [vmem:[%s2571_s22 + $0x68] sm:$0xff] %vm1949_vm12, %v1740_v19  ;;  %v1616_v49 = vmul.f32 %v1615_v36, %v1613_v34  ;;  %v1765_v51 = vshrl.u32 %v2260_v63, %v1756_v33  ;;  %v1768_v46 = vshrl.u32 %v2261_v1, %v1756_v33  ;;  %v1764_v2 = vshll.u32 %v2259_v61, %v1755_v23 }
 0x205   : > { %v1767_v52 = vshll.u32 %v2260_v63, %v1755_v23  ;;  %v1770_v12 = vshll.u32 %v2261_v1, %v1755_v23  ;;  %v1771_v45 = vshrl.u32 %v2262_v8, %v1756_v33  ;;  %v1908_v54 = vshll.u32 %v3511_v7, 30 }
 0x206   : > { %v1617_v29 = vxor.u32 2147483648, %v1616_v49  ;;  %v1760_v53 = vor.u32 %v1759_v18, %v1758_v37  ;;  %v1763_v4 = vor.u32 %v1762_v3, %v1761_v22  ;;  %v1766_v63 = vor.u32 %v1765_v51, %v1764_v2 }
 0x207   : > { %v1769_v62 = vor.u32 %v1768_v46, %v1767_v52  ;;  %v1772_v43 = vor.u32 %v1771_v45, %v1770_v12  ;;  %v1909_v61 = vsub.s32 %v1905_v0, %v1908_v54  ;;  %v1626_v1 = vadd.s32 3, %v1622_v24 }
 0x208   : > { %v1618_v59 = vsel %vm1535_vm11, %v1617_v29, %v1616_v49  ;;  %v1749_v35 = vor.u32 8388608, %v1748_v39  ;;  %vm1773_vm2 = vcmp.lt.s32.totalorder %v1754_v16, 1  ;;  %v1757_v48 = vshrl.u32 %v2257_v55, %v1756_v33 }
 0x209   : > { %v1621_v15 = vsel %vm3497_vm1, %v3265_v26, %v1618_v59  ;;  %v1911_v8 = vsub.s32 0, %v1909_v61  ;;  %vm1776_vm6 = vcmp.lt.s32.totalorder %v1754_v16, 4  ;;  %v1781_v13 = vsel %vm1773_vm2, %v1760_v53, %v1763_v4 }
 0x20a   : > { %2232 = vcosq.f32 %v1621_v15  ;;  %vm1774_vm4 = vcmp.lt.s32.totalorder %v1754_v16, 2  ;;  %vm1775_vm7 = vcmp.lt.s32.totalorder %v1754_v16, 3  ;;  %v1782_v58 = vsel %vm1776_vm6, %v1769_v62, 920167782 }
 0x20b   : > { %2234 = vsinq.f32 %v1621_v15  ;;  %v1786_v44 = vsel %vm1776_vm6, %v1772_v43, 1326507024  ;;  %v2094_v42 = vmin.u32 %v1911_v8, %v1909_v61  ;;  %v1778_v38 = vsel %vm1776_vm6, %v1766_v63, 2102212464 }
 0x20c   : > { %v1783_v20 = vsel %vm1775_vm7, %v1766_v63, %v1782_v58  ;;  %v1785_v50 = vsel %vm1773_vm2, %v1763_v4, %v1766_v63  ;;  %v1787_v56 = vsel %vm1775_vm7, %v1769_v62, %v1786_v44  ;;  %v1789_v57 = vshll.u32 %v1749_v35, 8 }
 0x20d   : > { %v1784_v6 = vsel %vm1774_vm4, %v1781_v13, %v1783_v20  ;;  %v1627_v32 = vand.u32 3, %v1626_v1  ;;  %v1913_v5 = vclz %v2094_v42  ;;  %v1777_v55 = vsel %vm1773_vm2, %v1757_v48, %v1760_v53 }
 0x20e   : > { %v1779_v21 = vsel %vm1775_vm7, %v1763_v4, %v1778_v38  ;;  %v1788_v28 = vsel %vm1774_vm4, %v1785_v50, %v1787_v56  ;;  %v3531_v31 = vmul.u32.u64.low %v1789_v57, %v1784_v6  ;;  %v3532_v17 = vmul.u32.u64.high %v1789_v57, %v1784_v6, %v3531_v31 }
 0x20f   : > { %v2095_v10 = vadd.s32 4294967294, %v1913_v5  ;;  %v3534_v27 = vmul.u32.u64.low %v1789_v57, %v1788_v28  ;;  %v3535_v23 = vmul.u32.u64.high %v1789_v57, %v1788_v28, %v3534_v27  ;;  %vm1628_vm8 = vcmp.lt.s32.totalorder %v1627_v32, 2 }
 0x210   : > { %vm1629_vm11 = vcmp.eq.s32.totalorder %v1627_v32, 0  ;;  %v1780_v34 = vsel %vm1774_vm4, %v1777_v55, %v1779_v21  ;;  %vm1632_vm9 = vcmp.eq.s32.totalorder %v1627_v32, 2  ;;  %v1799_v9 = vadd.s32 1, %v3532_v17 }
 0x211   : > { %vm2096_vm10 = vcmp.lt.s32.totalorder %v2095_v10, 0  ;;  %v1901_v33 = vadd.s32 %v3472_v30, %v3470_v40  ;;  %v1796_v18 = vmul.u32 %v1789_v57, %v1780_v34  ;;  %vm1798_vm13 = vc.u32 %v3535_v23, %v3531_v31 }
 0x212   : > { %v1916_v19 = vsel %vm2096_vm10, 0, %v2095_v10  ;;  %v1800_v29 = vsel %vm1798_vm13, %v1799_v9, %v3532_v17  ;;  %vm1625_vm14 = vweird.f32 %v3265_v26  ;;  %v1931_v15 = vsub.s32 4, %v3511_v7 }
 0x213   : > { %v1917_v49 = vsub.s32 32, %v1916_v19  ;;  %v1921_v24 = vsub.s32 4294967266, %v1916_v19  ;;  %v1918_v37 = vshll.u32 %v1909_v61, %v1916_v19  ;;  %v1801_v46 = vadd.s32 %v1800_v29, %v1796_v18 }
 0x214   : > { %v2233_v14 = vpop.eup %2232  ;;  %vm1847_vm15 = vcmp.lt.s32.totalorder %v3367_v25, 0  ;;  %vm1846_vm3 = vcmp.le.f32.partialorder %v1845_v47, 0.7853982  ;;  %v1797_v42 = vadd.s32 %v3531_v31, %v3535_v23  ;;  %vm1937_vm6 = vweird.f32 %v3367_v25 }
 0x215   : > { %v2235_v36 = vpop.eup %2234  ;;  %v1633_v0 = vxor.u32 2147483648, %v2233_v14  ;;  %v1919_v22 = vshrl.u32 %v1901_v33, %v1917_v49  ;;  %v1922_v3 = vadd.s32 127, %v1921_v24  ;;  %v1802_v52 = vadd.s32 536870912, %v1801_v46 }
 0x216   : > { %v1630_v39 = vxor.u32 2147483648, %v2235_v36  ;;  %v1932_v63 = vsel %vm1847_vm15, %v1931_v15, %v3511_v7  ;;  %vm1743_vm4 = vcmp.lt.s32.totalorder %v3430_v11, 0  ;;  %vm1742_vm7 = vcmp.le.f32.partialorder %v1741_v60, 0.7853982 }
 0x217   : > { %v1634_v41 = vsel %vm1632_vm9, %v1633_v0, %v2235_v36  ;;  %v1920_v30 = vor.u32 %v1919_v22, %v1918_v37  ;;  %v1923_v2 = vshll.u32 %v1922_v3, 23  ;;  %v1803_v45 = vshrl.u32 %v1802_v52, 30 }
 0x218   : > { %v1631_v16 = vsel %vm1629_vm11, %v2233_v14, %v1630_v39  ;;  %v1934_v8 = vsel %vm1846_vm3, 0, %v1932_v63  ;;  %vm1833_vm9 = vweird.f32 %v3430_v11 }
 0x219   : > { %v1635_v51 = vsel %vm1628_vm8, %v1631_v16, %v1634_v41  ;;  %v1924_v12 = vor.u32 4788187, %v1923_v2  ;;  %v1927_v54 = vcvt.s32.f32 %v1920_v30  ;;  %v1804_v53 = vshll.u32 %v1803_v45, 30 }
 0x21a   : > { %v1636_v40 = vsel %vm1625_vm14, nan, %v1635_v51  ;;  %v1938_v58 = vadd.s32 3, %v1934_v8  ;;  %v1827_v36 = vsub.s32 4, %v1803_v45 }
 0x21b   : > { %1962 = vst.msk [vmem:[%s2571_s22 + $0x60] sm:$0xff] %vm1949_vm12, %v1636_v40  ;;  %v1925_v59 = vand.u32 2147483647, %v1924_v12  ;;  %v1805_v62 = vsub.s32 %v1801_v46, %v1804_v53 }
 0x21c   : > { %v1939_v50 = vand.u32 3, %v1938_v58  ;;  %v1828_v9 = vsel %vm1743_vm4, %v1827_v36, %v1803_v45 }
 0x21d   : > { %v1928_v4 = vmul.f32 %v1927_v54, %v1925_v59  ;;  %v1807_v26 = vsub.s32 0, %v1805_v62 }
 0x21e   : > { %vm1944_vm5 = vcmp.eq.s32.totalorder %v1939_v50, 2  ;;  %vm1941_vm1 = vcmp.eq.s32.totalorder %v1939_v50, 0  ;;  %vm1940_vm2 = vcmp.lt.s32.totalorder %v1939_v50, 2 }
 0x21f   : > { %v1929_v43 = vxor.u32 2147483648, %v1928_v4  ;;  %v2090_v35 = vmin.u32 %v1807_v26, %v1805_v62 }
 0x221   : > { %v1930_v61 = vsel %vm1847_vm15, %v1929_v43, %v1928_v4  ;;  %v1809_v48 = vclz %v2090_v35 }
 0x222   : > { %v1933_v1 = vsel %vm1846_vm3, %v3367_v25, %v1930_v61  ;;  %v1830_v25 = vsel %vm1742_vm7, 0, %v1828_v9 }
 0x223   : > { %2236 = vcosq.f32 %v1933_v1  ;;  %v2091_v13 = vadd.s32 4294967294, %v1809_v48  ;;  %v1834_v33 = vadd.s32 3, %v1830_v25 }
 0x224   : > { %2238 = vsinq.f32 %v1933_v1 }
 0x225   : > { %vm2092_vm0 = vcmp.lt.s32.totalorder %v2091_v13, 0  ;;  %v1835_v49 = vand.u32 3, %v1834_v33 }
 0x226   : > { %v1812_v44 = vsel %vm2092_vm0, 0, %v2091_v13 }
 0x227   : > { %v1813_v38 = vsub.s32 32, %v1812_v44  ;;  %v1817_v20 = vsub.s32 4294967266, %v1812_v44  ;;  %v1814_v47 = vshll.u32 %v1805_v62, %v1812_v44  ;;  %vm1840_vm8 = vcmp.eq.s32.totalorder %v1835_v49, 2 }
 0x228   : > { %vm1837_vm11 = vcmp.eq.s32.totalorder %v1835_v49, 0  ;;  %vm1836_vm10 = vcmp.lt.s32.totalorder %v1835_v49, 2 }
 0x229   : > { %v1815_v6 = vshrl.u32 %v1797_v42, %v1813_v38  ;;  %v1818_v56 = vadd.s32 127, %v1817_v20 }
 0x22b   : > { %v1816_v5 = vor.u32 %v1815_v6, %v1814_v47  ;;  %v1819_v55 = vshll.u32 %v1818_v56, 23 }
 0x22d   : > { %v2237_v7 = vpop.eup %2236  ;;  %v1820_v17 = vor.u32 4788187, %v1819_v55  ;;  %v1823_v23 = vcvt.s32.f32 %v1816_v5 }
 0x22e   : > { %v2239_v57 = vpop.eup %2238  ;;  %v1945_v32 = vxor.u32 2147483648, %v2237_v7 }
 0x22f   : > { %v1942_v21 = vxor.u32 2147483648, %v2239_v57  ;;  %v1821_v27 = vand.u32 2147483647, %v1820_v17 }
 0x230   : > { %v1946_v28 = vsel %vm1944_vm5, %v1945_v32, %v2239_v57 }
 0x231   : > { %v1943_v10 = vsel %vm1941_vm1, %v2237_v7, %v1942_v21  ;;  %v1824_v34 = vmul.f32 %v1823_v23, %v1821_v27 }
 0x232   : > { %v1947_v31 = vsel %vm1940_vm2, %v1943_v10, %v1946_v28 }
 0x233   : > { %v1948_v14 = vsel %vm1937_vm6, nan, %v1947_v31  ;;  %v1825_v0 = vxor.u32 2147483648, %v1824_v34 }
 0x234   : > { %1965 = vst.msk [vmem:[%s2571_s22 + $0x78] sm:$0xff] %vm1949_vm12, %v1948_v14 }
 0x235   : > { %v1826_v19 = vsel %vm1743_vm4, %v1825_v0, %v1824_v34 }
 0x236   : > { %v1829_v39 = vsel %vm1742_vm7, %v3430_v11, %v1826_v19 }
 0x237   : > { %2240 = vcosq.f32 %v1829_v39 }
 0x238   : > { %2242 = vsinq.f32 %v1829_v39 }
 0x241   : > { %v2241_v24 = vpop.eup %2240 }
 0x242   : > { %v2243_v41 = vpop.eup %2242  ;;  %v1841_v37 = vxor.u32 2147483648, %v2241_v24 }
 0x243   : > { %v1838_v18 = vxor.u32 2147483648, %v2243_v41 }
 0x244   : > { %v1842_v16 = vsel %vm1840_vm8, %v1841_v37, %v2243_v41 }
 0x245   : > { %v1839_v22 = vsel %vm1837_vm11, %v2241_v24, %v1838_v18 }
 0x246   : > { %v1843_v60 = vsel %vm1836_vm10, %v1839_v22, %v1842_v16 }
 0x247   : > { %v1844_v3 = vsel %vm1833_vm9, nan, %v1843_v60 }
 0x248   : > { %1964 = vst.msk [vmem:[%s2571_s22 + $0x70] sm:$0xff] %vm1949_vm12, %v1844_v3 }
 0x249 PF: > { %s12_s9 = sadd.s32 1, %s2254_s9  }
 0x24a   : > { %p9_p4 = scmp.ge.s32.totalorder %s12_s9, 4  }
 0x24c   :  { %11 = sbr.rel (!%p9_p4) target bundleno = 1 (0x1), region = 58 }

</bundles_post_ra>
